<compile_context>
chip_gen: v6e
topology: v6e:2x2x1
jax: 0.10.0
libtpu: 0.0.40
codegen_flags: <defaults>
</compile_context>

<pallas_src>
import numpy as np
import jax
import jax.numpy as jnp
from jax.experimental import pallas as pl
from jax.experimental.pallas import tpu as pltpu

H = 1024   # sbert_large_mt_nlu_ru hidden size
D = 128    # head projection dim
OUT = 1
N_LAYERS_SUMMED = 4


# ---------------- Fused kernel: last-4-layer extraction + similarity head ----------
def fused_kernel(hs_def_ref, hs_samp_ref, mask_ref,
                 w1e_ref, b1e_ref, w2e_ref, b2e_ref,
                 w1d_ref, b1d_ref, w2d_ref, b2d_ref,
                 wo_ref, bo_ref,
                 y_ref,
                 def_acc, ex_acc, cnt_acc):
    # grid = (batch b, layer l in [0,4), seq tile s)
    l = pl.program_id(1)
    s = pl.program_id(2)
    n_l = pl.num_programs(1)
    n_s = pl.num_programs(2)

    @pl.when(jnp.logical_and(l == 0, s == 0))
    def _init():
        def_acc[...] = jnp.zeros_like(def_acc)
        ex_acc[...] = jnp.zeros_like(ex_acc)
        cnt_acc[...] = jnp.zeros_like(cnt_acc)

    # Definition branch: only token 0 of this layer is needed; add once per layer.
    @pl.when(s == 0)
    def _def():
        def_acc[...] += hs_def_ref[0, 0, 0:1, :]                     # (1, H)

    mask_row = mask_ref[0]                                           # (1, S_TILE)

    # Key-word token count (mask is layer-invariant; count once, at l == 0).
    @pl.when(l == 0)
    def _cnt():
        cnt_acc[...] += jnp.sum(mask_row, axis=-1, keepdims=True)    # (1, 1)

    # Example branch: masked sum over this (layer, seq-tile) as an MXU matmul.
    samp_tile = hs_samp_ref[0, 0]                                    # (S_TILE, H)
    ex_acc[...] += jnp.dot(mask_row, samp_tile,
                           preferred_element_type=jnp.float32)       # (1, H)

    # Fused similarity head on the final reduction step of this sample.
    @pl.when(jnp.logical_and(l == n_l - 1, s == n_s - 1))
    def _head():
        cnt = jnp.maximum(cnt_acc[...], 1.0)        # guard: empty key-word mask
        ex_emb = ex_acc[...] / cnt                  # (1, H) mean over kw tokens
        def_emb = jnp.tanh(def_acc[...])            # (1, H)

        ex1 = jnp.dot(ex_emb, w1e_ref[...],
                      preferred_element_type=jnp.float32) + b1e_ref[...]
        ex2 = jnp.tanh(jnp.dot(ex1, w2e_ref[...],
                               preferred_element_type=jnp.float32) + b2e_ref[...])
        de1 = jnp.dot(def_emb, w1d_ref[...],
                      preferred_element_type=jnp.float32) + b1d_ref[...]
        de2 = jnp.tanh(jnp.dot(de1, w2d_ref[...],
                               preferred_element_type=jnp.float32) + b2d_ref[...])
        dif = jnp.abs(ex2 - de2)
        y = jnp.dot(dif, wo_ref[...],
                    preferred_element_type=jnp.float32) + bo_ref[...]
        y_ref[0] = jax.nn.sigmoid(y)                                 # (1, OUT)


def semantic_similarity_forward(hs_def, hs_samp, kw_mask, params, *, s_tile=None):
    """hs_def/hs_samp: (B, L, S, H) f32 hidden states; kw_mask: (B, 1, S) f32."""
    B, L, S, Hh = hs_def.shape
    assert Hh == H and L >= N_LAYERS_SUMMED
    if s_tile is None:
        s_tile = S if S <= 256 else 256
    assert S % s_tile == 0
    n_s = S // s_tile
    def_rows = 8 if (S >= 8 and S % 8 == 0) else S   # minimal seq tile for token 0

    (w1e_t, b1e, w2e_t, b2e, w1d_t, b1d, w2d_t, b2d, wo_t, bo) = params

    const_2d = lambda b, l, s: (0, 0)
    in_specs = [
        # hs_def: only an 8-row seq tile of each of the last-4 layers.
        pl.BlockSpec((1, 1, def_rows, H), lambda b, l, s: (b, L - 4 + l, 0, 0)),
        # hs_samp: (layer, seq-tile) blocks of the last-4 layers only.
        pl.BlockSpec((1, 1, s_tile, H), lambda b, l, s: (b, L - 4 + l, s, 0)),
        # key-word mask, lane-major, per seq tile.
        pl.BlockSpec((1, 1, s_tile), lambda b, l, s: (b, 0, s)),
        # head weights: full arrays, constant block index -> DMA'd once, VMEM-resident.
        pl.BlockSpec((H, D), const_2d), pl.BlockSpec((1, D), const_2d),
        pl.BlockSpec((D, D), const_2d), pl.BlockSpec((1, D), const_2d),
        pl.BlockSpec((H, D), const_2d), pl.BlockSpec((1, D), const_2d),
        pl.BlockSpec((D, D), const_2d), pl.BlockSpec((1, D), const_2d),
        pl.BlockSpec((D, OUT), const_2d), pl.BlockSpec((1, OUT), const_2d),
    ]

    y = pl.pallas_call(
        fused_kernel,
        out_shape=jax.ShapeDtypeStruct((B, 1, OUT), jnp.float32),
        grid_spec=pltpu.PrefetchScalarGridSpec(
            num_scalar_prefetch=0,
            grid=(B, N_LAYERS_SUMMED, n_s),
            in_specs=in_specs,
            out_specs=pl.BlockSpec((1, 1, OUT), lambda b, l, s: (b, 0, 0)),
            scratch_shapes=[pltpu.VMEM((1, H), jnp.float32),   # def_acc
                            pltpu.VMEM((1, H), jnp.float32),   # ex_acc
                            pltpu.VMEM((1, 1), jnp.float32)],  # cnt_acc
        ),
        compiler_params=pltpu.CompilerParams(
            dimension_semantics=("parallel", "arbitrary", "arbitrary"),
            vmem_limit_bytes=32 * 1024 * 1024),
    )(hs_def, hs_samp, kw_mask,
      w1e_t, b1e, w2e_t, b2e, w1d_t, b1d, w2d_t, b2d, wo_t, bo)
    return y[:, 0, :]                                                # (B, OUT)


# ---------------- Plain-Python glue (exact copy of token_detection logic) ----------
def token_detection(token_map, position):
    begin, end = position
    pos = []
    for t in range(1, len(token_map) - 1):
        if token_map[t][0] == begin and token_map[t][1] == end:
            pos.append(t)
            break
        if token_map[t][0] >= begin and token_map[t][1] != end:
            pos.append(t)
        if token_map[t][0] != begin and token_map[t][1] == end:
            pos.append(t)
            break
    return pos


if __name__ == "__main__":
    key = jax.random.PRNGKey(0)
    B, L, S = 2, 8, 8                     # batch, num hidden-state layers, seq len
    k = jax.random.split(key, 8)

    hs_def = jax.random.normal(k[0], (B, L, S, H), jnp.float32) * 0.5
    hs_samp = jax.random.normal(k[1], (B, L, S, H), jnp.float32) * 0.5

    # synthetic tokenizer offset mappings + key-word char spans
    offset_map = [(0, 0), (0, 3), (4, 7), (8, 12), (13, 15), (16, 20), (21, 24), (0, 0)]
    offset_mapping_samp = [[offset_map], [offset_map]]
    samp_position_samp = [[4, 12], [13, 15]]      # multi-token kw, single-token kw

    kw_mask = np.zeros((B, 1, S), np.float32)     # lane-major mask: (B, 1, S)
    for i in range(B):
        positions = token_detection(offset_mapping_samp[i][0], samp_position_samp[i])
        for p in positions:
            kw_mask[i, 0, p] = 1.0
    kw_mask = jnp.asarray(kw_mask)

    # deterministic head params with nn.Linear shapes (out_features, in_features)
    def linear_init(kk, out_f, in_f):
        kw, kb = jax.random.split(kk)
        bound = 1.0 / np.sqrt(in_f)
        w = jax.random.uniform(kw, (out_f, in_f), jnp.float32, -bound, bound)
        b = jax.random.uniform(kb, (out_f,), jnp.float32, -bound, bound)
        return w, b

    w1e, b1e = linear_init(k[2], D, H)   # example_linear_1
    w2e, b2e = linear_init(k[3], D, D)   # example_linear_2
    w1d, b1d = linear_init(k[4], D, H)   # def_linear_1
    w2d, b2d = linear_init(k[5], D, D)   # def_linear_2
    wo, bo = linear_init(k[6], OUT, D)   # Linear

    params = (w1e.T, b1e.reshape(1, D), w2e.T, b2e.reshape(1, D),
              w1d.T, b1d.reshape(1, D), w2d.T, b2d.reshape(1, D),
              wo.T, bo.reshape(1, OUT))

    y = semantic_similarity_forward(hs_def, hs_samp, kw_mask, params)
    y = jax.block_until_ready(y)

    # pure-JAX reference check
    last4_def = hs_def[:, -4:].sum(1)
    def_ref = jnp.tanh(last4_def[:, 0, :])
    last4_samp = hs_samp[:, -4:].sum(1)
    m = kw_mask[:, 0, :]
    ex_ref = (last4_samp * m[:, :, None]).sum(1) / jnp.maximum(
        m.sum(1, keepdims=True), 1.0)
    e = ex_ref @ w1e.T + b1e
    e = jnp.tanh(e @ w2e.T + b2e)
    d = def_ref @ w1d.T + b1d
    d = jnp.tanh(d @ w2d.T + b2d)
    y_ref = jax.nn.sigmoid(jnp.abs(e - d) @ wo.T + bo)
    np.testing.assert_allclose(np.asarray(y), np.asarray(y_ref), atol=1e-5, rtol=1e-5)

    print("KERNEL_OK")
</pallas_src>

<mosaic_0001>
module attributes {stable_mosaic.version = 11 : i64} {
  func.func @fused_kernel(%arg0: i32, %arg1: i32, %arg2: i32, %arg3: memref<1x1x8x1024xf32, #tpu.memory_space<vmem>>, %arg4: memref<1x1x8x1024xf32, #tpu.memory_space<vmem>>, %arg5: memref<1x1x8xf32, #tpu.memory_space<vmem>>, %arg6: memref<1024x128xf32, #tpu.memory_space<vmem>>, %arg7: memref<1x128xf32, #tpu.memory_space<vmem>>, %arg8: memref<128x128xf32, #tpu.memory_space<vmem>>, %arg9: memref<1x128xf32, #tpu.memory_space<vmem>>, %arg10: memref<1024x128xf32, #tpu.memory_space<vmem>>, %arg11: memref<1x128xf32, #tpu.memory_space<vmem>>, %arg12: memref<128x128xf32, #tpu.memory_space<vmem>>, %arg13: memref<1x128xf32, #tpu.memory_space<vmem>>, %arg14: memref<128x1xf32, #tpu.memory_space<vmem>>, %arg15: memref<1x1xf32, #tpu.memory_space<vmem>>, %arg16: memref<1x1x1xf32, #tpu.memory_space<vmem>>, %arg17: memref<1x1024xf32, #tpu.memory_space<vmem>>, %arg18: memref<1x1024xf32, #tpu.memory_space<vmem>>, %arg19: memref<1x1xf32, #tpu.memory_space<vmem>>) attributes {dimension_semantics = [#tpu.dimension_semantics<parallel>, #tpu.dimension_semantics<arbitrary>, #tpu.dimension_semantics<arbitrary>], iteration_bounds = array<i64: 2, 4, 1>, scalar_prefetch = 0 : i64, scratch_operands = 3 : i64, tpu.core_type = #tpu.core_type<tc>, window_params = [{transform_indices = @transform_0, window_bounds = array<i64: 1, 1, 8, 1024>}, {transform_indices = @transform_1, window_bounds = array<i64: 1, 1, 8, 1024>}, {transform_indices = @transform_2, window_bounds = array<i64: 1, 1, 8>}, {pipeline_mode = #tpu.pipeline_mode<synchronous>, transform_indices = @transform_3, window_bounds = array<i64: 1024, 128>}, {pipeline_mode = #tpu.pipeline_mode<synchronous>, transform_indices = @transform_4, window_bounds = array<i64: 1, 128>}, {pipeline_mode = #tpu.pipeline_mode<synchronous>, transform_indices = @transform_5, window_bounds = array<i64: 128, 128>}, {pipeline_mode = #tpu.pipeline_mode<synchronous>, transform_indices = @transform_6, window_bounds = array<i64: 1, 128>}, {pipeline_mode = #tpu.pipeline_mode<synchronous>, transform_indices = @transform_7, window_bounds = array<i64: 1024, 128>}, {pipeline_mode = #tpu.pipeline_mode<synchronous>, transform_indices = @transform_8, window_bounds = array<i64: 1, 128>}, {pipeline_mode = #tpu.pipeline_mode<synchronous>, transform_indices = @transform_9, window_bounds = array<i64: 128, 128>}, {pipeline_mode = #tpu.pipeline_mode<synchronous>, transform_indices = @transform_10, window_bounds = array<i64: 1, 128>}, {pipeline_mode = #tpu.pipeline_mode<synchronous>, transform_indices = @transform_11, window_bounds = array<i64: 128, 1>}, {pipeline_mode = #tpu.pipeline_mode<synchronous>, transform_indices = @transform_12, window_bounds = array<i64: 1, 1>}, {transform_indices = @transform_13, window_bounds = array<i64: 1, 1, 1>}]} {
    %c0_i32 = arith.constant 0 : i32
    %0 = arith.cmpi eq, %arg1, %c0_i32 : i32
    %c0_i32_0 = arith.constant 0 : i32
    %1 = arith.cmpi eq, %arg2, %c0_i32_0 : i32
    %2 = arith.andi %0, %1 : i1
    %3 = arith.extui %2 : i1 to i32
    %c0_i32_1 = arith.constant 0 : i32
    %4 = arith.cmpi ne, %3, %c0_i32_1 : i32
    scf.if %4 {
      %cst_18 = arith.constant 0.000000e+00 : f32
      %24 = vector.broadcast %cst_18 : f32 to vector<1x1024xf32>
      %c0_19 = arith.constant 0 : index
      %c0_20 = arith.constant 0 : index
      %25 = vector.load %arg17[%c0_19, %c0_20] : memref<1x1024xf32, #tpu.memory_space<vmem>>, vector<1x1024xf32>
      tpu.vector_store %arg17[%c0_19, %c0_20], %24 {strides = array<i32>} : memref<1x1024xf32, #tpu.memory_space<vmem>>, vector<1x1024xf32>,
      %cst_21 = arith.constant 0.000000e+00 : f32
      %26 = vector.broadcast %cst_21 : f32 to vector<1x1024xf32>
      %c0_22 = arith.constant 0 : index
      %c0_23 = arith.constant 0 : index
      %27 = vector.load %arg18[%c0_22, %c0_23] : memref<1x1024xf32, #tpu.memory_space<vmem>>, vector<1x1024xf32>
      tpu.vector_store %arg18[%c0_22, %c0_23], %26 {strides = array<i32>} : memref<1x1024xf32, #tpu.memory_space<vmem>>, vector<1x1024xf32>,
      %cst_24 = arith.constant 0.000000e+00 : f32
      %28 = vector.broadcast %cst_24 : f32 to vector<1x1xf32>
      %c0_25 = arith.constant 0 : index
      %c0_26 = arith.constant 0 : index
      %29 = vector.load %arg19[%c0_25, %c0_26] : memref<1x1xf32, #tpu.memory_space<vmem>>, vector<1x1xf32>
      tpu.vector_store %arg19[%c0_25, %c0_26], %28 {strides = array<i32>} : memref<1x1xf32, #tpu.memory_space<vmem>>, vector<1x1xf32>,
    } else {
    }
    %c0_i32_2 = arith.constant 0 : i32
    %5 = arith.cmpi eq, %arg2, %c0_i32_2 : i32
    %6 = arith.extui %5 : i1 to i32
    %c0_i32_3 = arith.constant 0 : i32
    %7 = arith.cmpi ne, %6, %c0_i32_3 : i32
    scf.if %7 {
      %c0_18 = arith.constant 0 : index
      %c0_19 = arith.constant 0 : index
      %24 = vector.load %arg17[%c0_18, %c0_19] : memref<1x1024xf32, #tpu.memory_space<vmem>>, vector<1x1024xf32>
      %c0_20 = arith.constant 0 : index
      %c0_21 = arith.constant 0 : index
      %c0_22 = arith.constant 0 : index
      %c0_23 = arith.constant 0 : index
      %25 = vector.load %arg3[%c0_20, %c0_21, %c0_22, %c0_23] : memref<1x1x8x1024xf32, #tpu.memory_space<vmem>>, vector<1x1x1x1024xf32>
      %26 = vector.shape_cast %25 : vector<1x1x1x1024xf32> to vector<1x1024xf32>
      %27 = arith.addf %24, %26 : vector<1x1024xf32>
      %c0_24 = arith.constant 0 : index
      %c0_25 = arith.constant 0 : index
      %28 = vector.load %arg17[%c0_24, %c0_25] : memref<1x1024xf32, #tpu.memory_space<vmem>>, vector<1x1024xf32>
      tpu.vector_store %arg17[%c0_24, %c0_25], %27 {strides = array<i32>} : memref<1x1024xf32, #tpu.memory_space<vmem>>, vector<1x1024xf32>,
    } else {
    }
    %c0 = arith.constant 0 : index
    %c0_4 = arith.constant 0 : index
    %c0_5 = arith.constant 0 : index
    %8 = vector.load %arg5[%c0, %c0_4, %c0_5] : memref<1x1x8xf32, #tpu.memory_space<vmem>>, vector<1x1x8xf32>
    %9 = vector.shape_cast %8 : vector<1x1x8xf32> to vector<1x8xf32>
    %c0_i32_6 = arith.constant 0 : i32
    %10 = arith.cmpi eq, %arg1, %c0_i32_6 : i32
    %11 = arith.extui %10 : i1 to i32
    %c0_i32_7 = arith.constant 0 : i32
    %12 = arith.cmpi ne, %11, %c0_i32_7 : i32
    scf.if %12 {
      %c0_18 = arith.constant 0 : index
      %c0_19 = arith.constant 0 : index
      %24 = vector.load %arg19[%c0_18, %c0_19] : memref<1x1xf32, #tpu.memory_space<vmem>>, vector<1x1xf32>
      %cst_20 = arith.constant dense<0.000000e+00> : vector<1xf32>
      %25 = vector.multi_reduction <add>, %9, %cst_20 [1] : vector<1x8xf32> to vector<1xf32>
      %26 = vector.shape_cast %25 : vector<1xf32> to vector<1x1xf32>
      %27 = arith.addf %24, %26 : vector<1x1xf32>
      %c0_21 = arith.constant 0 : index
      %c0_22 = arith.constant 0 : index
      %28 = vector.load %arg19[%c0_21, %c0_22] : memref<1x1xf32, #tpu.memory_space<vmem>>, vector<1x1xf32>
      tpu.vector_store %arg19[%c0_21, %c0_22], %27 {strides = array<i32>} : memref<1x1xf32, #tpu.memory_space<vmem>>, vector<1x1xf32>,
    } else {
    }
    %c0_8 = arith.constant 0 : index
    %c0_9 = arith.constant 0 : index
    %c0_10 = arith.constant 0 : index
    %c0_11 = arith.constant 0 : index
    %13 = vector.load %arg4[%c0_8, %c0_9, %c0_10, %c0_11] : memref<1x1x8x1024xf32, #tpu.memory_space<vmem>>, vector<1x1x8x1024xf32>
    %14 = vector.shape_cast %13 : vector<1x1x8x1024xf32> to vector<8x1024xf32>
    %c0_12 = arith.constant 0 : index
    %c0_13 = arith.constant 0 : index
    %15 = vector.load %arg18[%c0_12, %c0_13] : memref<1x1024xf32, #tpu.memory_space<vmem>>, vector<1x1024xf32>
    %cst = arith.constant dense<0.000000e+00> : vector<1x1024xf32>
    %16 = tpu.matmul %9, %14, %cst {dimension_numbers = #tpu.dot_dimension_numbers<[1], [0], [0], [1], [0, 0, 1, 1], [], []>} : vector<1x8xf32>, vector<8x1024xf32>, vector<1x1024xf32> -> vector<1x1024xf32>
    %17 = arith.addf %15, %16 : vector<1x1024xf32>
    %c0_14 = arith.constant 0 : index
    %c0_15 = arith.constant 0 : index
    %18 = vector.load %arg18[%c0_14, %c0_15] : memref<1x1024xf32, #tpu.memory_space<vmem>>, vector<1x1024xf32>
    tpu.vector_store %arg18[%c0_14, %c0_15], %17 {strides = array<i32>} : memref<1x1024xf32, #tpu.memory_space<vmem>>, vector<1x1024xf32>,
    %c3_i32 = arith.constant 3 : i32
    %19 = arith.cmpi eq, %arg1, %c3_i32 : i32
    %c0_i32_16 = arith.constant 0 : i32
    %20 = arith.cmpi eq, %arg2, %c0_i32_16 : i32
    %21 = arith.andi %19, %20 : i1
    %22 = arith.extui %21 : i1 to i32
    %c0_i32_17 = arith.constant 0 : i32
    %23 = arith.cmpi ne, %22, %c0_i32_17 : i32
    scf.if %23 {
      %c0_18 = arith.constant 0 : index
      %c0_19 = arith.constant 0 : index
      %24 = vector.load %arg19[%c0_18, %c0_19] : memref<1x1xf32, #tpu.memory_space<vmem>>, vector<1x1xf32>
      %cst_20 = arith.constant 1.000000e+00 : f32
      %25 = vector.broadcast %cst_20 : f32 to vector<1x1xf32>
      %26 = arith.maximumf %24, %25 : vector<1x1xf32>
      %c0_21 = arith.constant 0 : index
      %c0_22 = arith.constant 0 : index
      %27 = vector.load %arg18[%c0_21, %c0_22] : memref<1x1024xf32, #tpu.memory_space<vmem>>, vector<1x1024xf32>
      %28 = vector.broadcast %26 : vector<1x1xf32> to vector<1x1024xf32>
      %29 = arith.divf %27, %28 : vector<1x1024xf32>
      %c0_23 = arith.constant 0 : index
      %c0_24 = arith.constant 0 : index
      %30 = vector.load %arg17[%c0_23, %c0_24] : memref<1x1024xf32, #tpu.memory_space<vmem>>, vector<1x1024xf32>
      %31 = math.tanh %30 : vector<1x1024xf32>
      %c0_25 = arith.constant 0 : index
      %c0_26 = arith.constant 0 : index
      %32 = vector.load %arg6[%c0_25, %c0_26] : memref<1024x128xf32, #tpu.memory_space<vmem>>, vector<1024x128xf32>
      %cst_27 = arith.constant dense<0.000000e+00> : vector<1x128xf32>
      %33 = tpu.matmul %29, %32, %cst_27 {dimension_numbers = #tpu.dot_dimension_numbers<[1], [0], [0], [1], [0, 0, 1, 1], [], []>} : vector<1x1024xf32>, vector<1024x128xf32>, vector<1x128xf32> -> vector<1x128xf32>
      %c0_28 = arith.constant 0 : index
      %c0_29 = arith.constant 0 : index
      %34 = vector.load %arg7[%c0_28, %c0_29] : memref<1x128xf32, #tpu.memory_space<vmem>>, vector<1x128xf32>
      %35 = arith.addf %33, %34 : vector<1x128xf32>
      %c0_30 = arith.constant 0 : index
      %c0_31 = arith.constant 0 : index
      %36 = vector.load %arg8[%c0_30, %c0_31] : memref<128x128xf32, #tpu.memory_space<vmem>>, vector<128x128xf32>
      %cst_32 = arith.constant dense<0.000000e+00> : vector<1x128xf32>
      %37 = tpu.matmul %35, %36, %cst_32 {dimension_numbers = #tpu.dot_dimension_numbers<[1], [0], [0], [1], [0, 0, 1, 1], [], []>} : vector<1x128xf32>, vector<128x128xf32>, vector<1x128xf32> -> vector<1x128xf32>
      %c0_33 = arith.constant 0 : index
      %c0_34 = arith.constant 0 : index
      %38 = vector.load %arg9[%c0_33, %c0_34] : memref<1x128xf32, #tpu.memory_space<vmem>>, vector<1x128xf32>
      %39 = arith.addf %37, %38 : vector<1x128xf32>
      %40 = math.tanh %39 : vector<1x128xf32>
      %c0_35 = arith.constant 0 : index
      %c0_36 = arith.constant 0 : index
      %41 = vector.load %arg10[%c0_35, %c0_36] : memref<1024x128xf32, #tpu.memory_space<vmem>>, vector<1024x128xf32>
      %cst_37 = arith.constant dense<0.000000e+00> : vector<1x128xf32>
      %42 = tpu.matmul %31, %41, %cst_37 {dimension_numbers = #tpu.dot_dimension_numbers<[1], [0], [0], [1], [0, 0, 1, 1], [], []>} : vector<1x1024xf32>, vector<1024x128xf32>, vector<1x128xf32> -> vector<1x128xf32>
      %c0_38 = arith.constant 0 : index
      %c0_39 = arith.constant 0 : index
      %43 = vector.load %arg11[%c0_38, %c0_39] : memref<1x128xf32, #tpu.memory_space<vmem>>, vector<1x128xf32>
      %44 = arith.addf %42, %43 : vector<1x128xf32>
      %c0_40 = arith.constant 0 : index
      %c0_41 = arith.constant 0 : index
      %45 = vector.load %arg12[%c0_40, %c0_41] : memref<128x128xf32, #tpu.memory_space<vmem>>, vector<128x128xf32>
      %cst_42 = arith.constant dense<0.000000e+00> : vector<1x128xf32>
      %46 = tpu.matmul %44, %45, %cst_42 {dimension_numbers = #tpu.dot_dimension_numbers<[1], [0], [0], [1], [0, 0, 1, 1], [], []>} : vector<1x128xf32>, vector<128x128xf32>, vector<1x128xf32> -> vector<1x128xf32>
      %c0_43 = arith.constant 0 : index
      %c0_44 = arith.constant 0 : index
      %47 = vector.load %arg13[%c0_43, %c0_44] : memref<1x128xf32, #tpu.memory_space<vmem>>, vector<1x128xf32>
      %48 = arith.addf %46, %47 : vector<1x128xf32>
      %49 = math.tanh %48 : vector<1x128xf32>
      %50 = arith.subf %40, %49 : vector<1x128xf32>
      %51 = math.absf %50 : vector<1x128xf32>
      %c0_45 = arith.constant 0 : index
      %c0_46 = arith.constant 0 : index
      %52 = vector.load %arg14[%c0_45, %c0_46] : memref<128x1xf32, #tpu.memory_space<vmem>>, vector<128x1xf32>
      %cst_47 = arith.constant dense<0.000000e+00> : vector<1x1xf32>
      %53 = tpu.matmul %51, %52, %cst_47 {dimension_numbers = #tpu.dot_dimension_numbers<[1], [0], [0], [1], [0, 0, 1, 1], [], []>} : vector<1x128xf32>, vector<128x1xf32>, vector<1x1xf32> -> vector<1x1xf32>
      %c0_48 = arith.constant 0 : index
      %c0_49 = arith.constant 0 : index
      %54 = vector.load %arg15[%c0_48, %c0_49] : memref<1x1xf32, #tpu.memory_space<vmem>>, vector<1x1xf32>
      %55 = arith.addf %53, %54 : vector<1x1xf32>
      %56 = arith.negf %55 : vector<1x1xf32>
      %57 = math.exp %56 : vector<1x1xf32>
      %cst_50 = arith.constant 1.000000e+00 : f32
      %58 = vector.broadcast %cst_50 : f32 to vector<1x1xf32>
      %59 = arith.addf %58, %57 : vector<1x1xf32>
      %60 = arith.divf %58, %59 : vector<1x1xf32>
      %c0_51 = arith.constant 0 : index
      %c0_52 = arith.constant 0 : index
      %c0_53 = arith.constant 0 : index
      %61 = vector.load %arg16[%c0_51, %c0_52, %c0_53] : memref<1x1x1xf32, #tpu.memory_space<vmem>>, vector<1x1x1xf32>
      %62 = vector.shape_cast %61 : vector<1x1x1xf32> to vector<1x1xf32>
      %63 = vector.shape_cast %60 : vector<1x1xf32> to vector<1x1x1xf32>
      tpu.vector_store %arg16[%c0_51, %c0_52, %c0_53], %63 {strides = array<i32>} : memref<1x1x1xf32, #tpu.memory_space<vmem>>, vector<1x1x1xf32>,
    } else {
    }
    return
  }
  func.func @transform_0(%arg0: i32, %arg1: i32, %arg2: i32) -> (i32, i32, i32, i32) {
    %c4_i32 = arith.constant 4 : i32
    %0 = arith.addi %c4_i32, %arg1 : i32
    %c0_i32 = arith.constant 0 : i32
    %c0_i32_0 = arith.constant 0 : i32
    %c0_i32_1 = arith.constant 0 : i32
    return %arg0, %0, %c0_i32, %c0_i32_0 : i32, i32, i32, i32
  }
  func.func @transform_1(%arg0: i32, %arg1: i32, %arg2: i32) -> (i32, i32, i32, i32) {
    %c4_i32 = arith.constant 4 : i32
    %0 = arith.addi %c4_i32, %arg1 : i32
    %c0_i32 = arith.constant 0 : i32
    %c0_i32_0 = arith.constant 0 : i32
    return %arg0, %0, %arg2, %c0_i32 : i32, i32, i32, i32
  }
  func.func @transform_2(%arg0: i32, %arg1: i32, %arg2: i32) -> (i32, i32, i32) {
    %c0_i32 = arith.constant 0 : i32
    %c0_i32_0 = arith.constant 0 : i32
    return %arg0, %c0_i32, %arg2 : i32, i32, i32
  }
  func.func @transform_3(%arg0: i32, %arg1: i32, %arg2: i32) -> (i32, i32) {
    %c0_i32 = arith.constant 0 : i32
    %c0_i32_0 = arith.constant 0 : i32
    %c0_i32_1 = arith.constant 0 : i32
    return %c0_i32, %c0_i32_0 : i32, i32
  }
  func.func @transform_4(%arg0: i32, %arg1: i32, %arg2: i32) -> (i32, i32) {
    %c0_i32 = arith.constant 0 : i32
    %c0_i32_0 = arith.constant 0 : i32
    %c0_i32_1 = arith.constant 0 : i32
    return %c0_i32, %c0_i32_0 : i32, i32
  }
  func.func @transform_5(%arg0: i32, %arg1: i32, %arg2: i32) -> (i32, i32) {
    %c0_i32 = arith.constant 0 : i32
    %c0_i32_0 = arith.constant 0 : i32
    %c0_i32_1 = arith.constant 0 : i32
    return %c0_i32, %c0_i32_0 : i32, i32
  }
  func.func @transform_6(%arg0: i32, %arg1: i32, %arg2: i32) -> (i32, i32) {
    %c0_i32 = arith.constant 0 : i32
    %c0_i32_0 = arith.constant 0 : i32
    %c0_i32_1 = arith.constant 0 : i32
    return %c0_i32, %c0_i32_0 : i32, i32
  }
  func.func @transform_7(%arg0: i32, %arg1: i32, %arg2: i32) -> (i32, i32) {
    %c0_i32 = arith.constant 0 : i32
    %c0_i32_0 = arith.constant 0 : i32
    %c0_i32_1 = arith.constant 0 : i32
    return %c0_i32, %c0_i32_0 : i32, i32
  }
  func.func @transform_8(%arg0: i32, %arg1: i32, %arg2: i32) -> (i32, i32) {
    %c0_i32 = arith.constant 0 : i32
    %c0_i32_0 = arith.constant 0 : i32
    %c0_i32_1 = arith.constant 0 : i32
    return %c0_i32, %c0_i32_0 : i32, i32
  }
  func.func @transform_9(%arg0: i32, %arg1: i32, %arg2: i32) -> (i32, i32) {
    %c0_i32 = arith.constant 0 : i32
    %c0_i32_0 = arith.constant 0 : i32
    %c0_i32_1 = arith.constant 0 : i32
    return %c0_i32, %c0_i32_0 : i32, i32
  }
  func.func @transform_10(%arg0: i32, %arg1: i32, %arg2: i32) -> (i32, i32) {
    %c0_i32 = arith.constant 0 : i32
    %c0_i32_0 = arith.constant 0 : i32
    %c0_i32_1 = arith.constant 0 : i32
    return %c0_i32, %c0_i32_0 : i32, i32
  }
  func.func @transform_11(%arg0: i32, %arg1: i32, %arg2: i32) -> (i32, i32) {
    %c0_i32 = arith.constant 0 : i32
    %c0_i32_0 = arith.constant 0 : i32
    %c0_i32_1 = arith.constant 0 : i32
    return %c0_i32, %c0_i32_0 : i32, i32
  }
  func.func @transform_12(%arg0: i32, %arg1: i32, %arg2: i32) -> (i32, i32) {
    %c0_i32 = arith.constant 0 : i32
    %c0_i32_0 = arith.constant 0 : i32
    %c0_i32_1 = arith.constant 0 : i32
    return %c0_i32, %c0_i32_0 : i32, i32
  }
  func.func @transform_13(%arg0: i32, %arg1: i32, %arg2: i32) -> (i32, i32, i32) {
    %c0_i32 = arith.constant 0 : i32
    %c0_i32_0 = arith.constant 0 : i32
    %c0_i32_1 = arith.constant 0 : i32
    return %arg0, %c0_i32, %c0_i32_0 : i32, i32, i32
  }
}

</mosaic_0001>

<bundles_post_ra>
// kernel: tpu_custom_call.1
= control target key start
LH: loop header
LB: loop body
LE: loop exit
PB: predicated region body
PF: predicated region fallthrough
CT: control target
= control target key end

     0   :  { %s3692_s0 = inlined_call_operand.hbm [shape: f32[2,8,8,1024], index: 0, kind: input, shape index: {}]   ;;  %s3693_s1 = inlined_call_operand.hbm [shape: f32[2,8,8,1024], index: 1, kind: input, shape index: {}]   ;;  %s3694_s2 = inlined_call_operand.vmem [shape: f32[2,1,8], index: 2, kind: input, shape index: {}]   ;;  %s3695_s3 = inlined_call_operand.hbm [shape: f32[1024,128], index: 3, kind: input, shape index: {}]   ;;  %s3696_s4 = inlined_call_operand.vmem [shape: f32[1,128], index: 4, kind: input, shape index: {}]   ;;  %s3697_s5 = inlined_call_operand.vmem [shape: f32[128,128], index: 5, kind: input, shape index: {}]   ;;  %s3698_s6 = inlined_call_operand.vmem [shape: f32[1,128], index: 6, kind: input, shape index: {}]   ;;  %s3699_s7 = inlined_call_operand.hbm [shape: f32[1024,128], index: 7, kind: input, shape index: {}]   ;;  %s3700_s8 = inlined_call_operand.vmem [shape: f32[1,128], index: 8, kind: input, shape index: {}]   ;;  %s3701_s9 = inlined_call_operand.hbm [shape: f32[128,128], index: 9, kind: input, shape index: {}]   ;;  %s3702_s10 = inlined_call_operand.vmem [shape: f32[1,128], index: 10, kind: input, shape index: {}]   ;;  %s3703_s11 = inlined_call_operand.vmem [shape: f32[128,1], index: 11, kind: input, shape index: {}]   ;;  %s3704_s12 = inlined_call_operand.<no memory space> [shape: f32[1,1], index: 12, kind: input, shape index: {}]   ;;  %s3705_s13 = inlined_call_operand.vmem [shape: f32[2,1,1], index: 13, kind: output, shape index: {}]  }
   0x1   :  { %3713 = sst [smem:[#allocation19_spill]] %s3695_s3  ;;  %v18_v0 = vstv %s3704_s12 }
   0x2   :  { %3714 = sst [smem:[#allocation20_spill]] %s3696_s4  ;;  %19 = vst [vmem:[#allocation5] sm:$0x1] %v18_v0 }
   0x3   :  { %3715 = sst [smem:[#allocation21_spill]] %s3697_s5 }
   0x4   :  { %3716 = sst [smem:[#allocation22_spill]] %s3698_s6 }
   0x5   :  { %3717 = sst [smem:[#allocation23_spill]] %s3699_s7 }
   0x6   :  { %3718 = sst [smem:[#allocation24_spill]] %s3700_s8 }
   0x7   :  { %3719 = sst [smem:[#allocation25_spill]] %s3701_s9 }
   0x8   :  { %3720 = sst [smem:[#allocation26_spill]] %s3702_s10 }
   0x9   :  { %3721 = sst [smem:[#allocation27_spill]] %s3703_s11 }
   0xa   :  { %3722 = sst [smem:[#allocation28_spill]] %s3705_s13 }
   0xb   :  { %20 = vsyncpa [#allocation7], 0 }
   0xc   :  { %22 = vsyncpa [#allocation7 + $0x1], 0 }
   0xd   :  { %23 = vsyncpa [#allocation9], 0 }
   0xe   :  { %25 = vsyncpa [#allocation9 + $0x1], 0 }
   0xf   :  { %26 = vsyncpa [#allocation12], 0  ;;  %s3229_s27 = smov 0   ;;  %s3231_s28 = smov 0  }
  0x10   :  { %s3233_s29 = smov 0   ;;  %s3235_s30 = smov 0  }
  0x11   :  { %s3237_s14 = smov 0   ;;  %s3239_s15 = smov 0  }
  0x12   :  { %s3241_s16 = smov 0   ;;  %s3243_s12 = smov 0  }
  0x13 LB: > { %s3706_s17 = sadd.s32 4294967295, %s3141_s12   ;;  %p75_p0 = scmp.ne.s32.totalorder %s3117_s28, %s3113_s27  ;;  %s3141_s12 = sphi %s3243_s12, %s32_s12   ;;  %s3137_s16 = sphi %s3241_s16, %s3751_s16   ;;  %s3133_s15 = sphi %s3239_s15, %s3750_s15   ;;  %s3129_s14 = sphi %s3237_s14, %s3749_s14   ;;  %s3125_s30 = sphi %s3235_s30, %s3748_s30   ;;  %s3121_s29 = sphi %s3233_s29, %s3747_s29   ;;  %s3117_s28 = sphi %s3231_s28, %s3746_s28   ;;  %s3113_s27 = sphi %s3229_s27, %s3745_s27  }
  0x14   : > { %p3271_p1 = scmp.eq.s32.totalorder %s3706_s17, 0  ;;  %p2332_p2 = scmp.ge.s32.totalorder %s3141_s12, 1 }
  0x15   : > { %p382_p3 = scmp.lt.s32.totalorder %s3141_s12, 9  ;;  %s3143_s21 = smov [#allocation10]  }
  0x16   : > { %s3723_s18 = scalar_select %p3271_p1, 1, 0 }
  0x17   : > { %p3279_p4 = por %p3271_p1, %p75_p0  ;;  %p3283_p5 = pnand %p2332_p2, %p382_p3 }
  0x18   : > { %s394_s22 = sshll.u32 %s3143_s21, 4  ;;  %s3144_s24 = smov [#allocation11]   ;;  %s395_s22 = int_to_ptr.vmem [resolvable:$true] %s394_s22 }
  0x19   : > { %s3724_s19 = scalar_select %p3279_p4, 1, 0 }
  0x1a   : > { %p2815_p6 = pneg %p3283_p5  ;;  %s416_s25 = sshll.u32 %s3144_s24, 4  ;;  %s417_s25 = int_to_ptr.vmem [resolvable:$true] %s416_s25 }
  0x1b   : > { %s3145_s26 = smov [#allocation13]   ;;  %s2938_s17 = scalar_lea.vmem %s395_s22, 16384 }
  0x1c   : > { %p3291_p7 = pnand %p2815_p6, %p3271_p1  ;;  %s432_s27 = sshll.u32 %s3145_s26, 4  ;;  %s433_s27 = int_to_ptr.vmem [resolvable:$true] %s432_s27 }
  0x1d   : > { %p2939_p9 = scmp.ne.s32.totalorder %s395_s22, %s2938_s17  ;;  %p2946_p12 = scmp.lt.s32.totalorder %s395_s22, %s395_s22 }
  0x1e   : > { %p2929_p8 = pneg %p3291_p7  ;;  %p2947_p13 = scmp.lt.s32.totalorder %s2938_s17, %s2938_s17 }
  0x20   : > { %p2941_p10 = pnand %p2939_p9, %p2929_p8  ;;  %p2948_p0 = por %p2947_p13, %p2946_p12 }
  0x22   : > { %p2942_p11 = pneg %p2941_p10 }
  0x24   : > { %p2949_p2 = pnand %p2948_p0, %p2942_p11 }
  0x26   : > { %2952 = shalt.err (!%p2949_p2)
}
  0x27   : > { %s3146_s21 = smov 128   ;;  %s3147_s24 = smov 8  }
  0x28   : > { %s3727_s3 = sld [smem:[#allocation19_spill]]  ;;  %s2964_s6 = scalar_lea.vmem %s417_s25, 16384 }
  0x29   : > { %p2965_p3 = scmp.ne.s32.totalorder %s417_s25, %s2964_s6  ;;  %p2972_p10 = scmp.lt.s32.totalorder %s417_s25, %s417_s25 }
  0x2a   : > { %p2973_p1 = scmp.lt.s32.totalorder %s2964_s6, %s2964_s6 }
  0x2b   : > { %p2967_p6 = pnand %p2965_p3, %p2929_p8 }
  0x2c   : > { %p2974_p12 = por %p2973_p1, %p2972_p10 }
  0x2d   : > { %p2968_p9 = pneg %p2967_p6 }
  0x2e   : > { %2818 = dma.hbm_to_vmem [thread:$0]  (!%p3291_p7), %s3727_s3, 16384, %s395_s22, [#allocation9], %s3146_s21, %s3146_s21, %s3147_s24  }
  0x2f   : > { %p2975_p11 = pnand %p2974_p12, %p2968_p9 }
  0x31   : > { %2978 = shalt.err (!%p2975_p11)
}
  0x32   : > { %s3728_s7 = sld [smem:[#allocation23_spill]]  ;;  %s2990_s10 = scalar_lea.vmem %s433_s27, 2048 }
  0x33   : > { %p2991_p13 = scmp.ne.s32.totalorder %s433_s27, %s2990_s10  ;;  %p2998_p3 = scmp.lt.s32.totalorder %s433_s27, %s433_s27 }
  0x34   : > { %p2999_p6 = scmp.lt.s32.totalorder %s2990_s10, %s2990_s10 }
  0x35   : > { %p2993_p0 = pnand %p2991_p13, %p2929_p8 }
  0x36   : > { %p3000_p4 = por %p2999_p6, %p2998_p3 }
  0x37   : > { %p2994_p2 = pneg %p2993_p0 }
  0x38   : > { %2821 = dma.hbm_to_vmem [thread:$0]  (!%p3291_p7), %s3728_s7, 16384, %s417_s25, [#allocation12], %s3146_s21, %s3146_s21, %s3147_s24  }
  0x39   : > { %p3001_p1 = pnand %p3000_p4, %p2994_p2 }
  0x3b   : > { %3004 = shalt.err (!%p3001_p1)
}
  0x3c   : > { %s3729_s9 = sld [smem:[#allocation25_spill]]  ;;  %s47_s8 = sadd.s32 1, %s3133_s15 }
  0x3d   : > { %p49_p4 = scmp.ge.s32.totalorder %s47_s8, 4  ;;  %s51_s25 = sadd.s32 1, %s3137_s16 }
  0x3e   : > { %s55_s26 = sadd.s32 4, %s3133_s15  ;;  %s62_s23 = sadd.s32 1, %s3121_s29 }
  0x3f   : > { %s3753_s8 = smov (%p49_p4, %s47_s8), 0  ;;  %s3755_s25 = smov (!%p49_p4, %s51_s25), %s3137_s16 }
  0x40   : > { %3730 = sst [smem:[#allocation18_spill]] %s3753_s8  ;;  %s56_s17 = sadd.s32 4, %s3753_s8 }
  0x41   : > { %p69_p8 = scmp.ne.s32.totalorder %s3121_s29, %s3117_s28  ;;  %p53_p9 = scmp.ge.s32.totalorder %s3755_s25, 2 }
  0x42   : > { %2824 = dma.hbm_to_vmem [thread:$0]  (!%p3291_p7), %s3729_s9, 2048, %s433_s27, [#allocation12], %s3146_s21, %s3146_s21, %s3147_s24  }
  0x43   : > { %s58_s10 = ssub.s32 %s55_s26, %s56_s17  ;;  %p70_p10 = scmp.eq.s32.totalorder %s3141_s12, 0 }
  0x44   : > { %p2835_p7 = scmp.lt.s32.totalorder %s3141_s12, 8  ;;  %s3757_s25 = smov (%p53_p9, %s3755_s25), 0 }
  0x45   : > { %p3335_p12 = por %p70_p10, %p69_p8  ;;  %s455_s21 = sand.u32 1, %s3121_s29  }
  0x46   : > { %s57_s24 = ssub.s32 %s3137_s16, %s3757_s25  ;;  %s3342_s22 = sshll.u32 %s455_s21, 6 }
  0x47   : > { %s59_s6 = sor.u32 %s58_s10, %s57_s24  ;;  %s2338_s3 = sshll.u32 %s3133_s15, 3 }
  0x48   : > { %p60_p11 = scmp.eq.s32.totalorder %s59_s6, 0  ;;  %s2339_s26 = sshll.u32 %s3137_s16, 6 }
  0x49   : > { %s2213_s7 = sadd.s32 %s2339_s26, %s2338_s3  ;;  %s459_s9 = scalar_lea.vmem [#allocation6], %s3342_s22 }
  0x4a   : > { %s3347_s17 = scalar_select %p60_p11, %s3121_s29, %s62_s23  }
  0x4b   : > { %s470_s8 = sshll.u32 %s459_s9, 4  ;;  %s2340_s11 = sshll.u32 %s2213_s7, 7  ;;  %s471_s8 = int_to_ptr.vmem [resolvable:$true] %s470_s8 }
  0x4c   : > { %s2215_s13 = scalar_lea.hbm %s3692_s0, %s2340_s11  ;;  %p3357_p13 = pnand %p2835_p7, %p3335_p12 }
  0x4d   : > { %s2216_s24 = scalar_lea.hbm %s2215_s13, 4096  ;;  %s3364_s3 = scalar_lea.hbm %s3693_s1, %s2340_s11 }
  0x4e   : > { %s456_s7 = scalar_lea.sflag [#allocation7], %s455_s21  ;;  %p3007_p0 = pneg %p3357_p13 }
  0x4f   : > { %s3018_s9 = scalar_lea.vmem %s471_s8, 1024  ;;  %s3148_s4 = smov [#allocation6]  }
  0x50   : > { %p3019_p2 = scmp.ne.s32.totalorder %s471_s8, %s3018_s9  ;;  %s3023_s5 = sshll.u32 %s3148_s4, 4  ;;  %s3024_s5 = int_to_ptr.vmem [resolvable:$false] %s3023_s5 }
  0x51   : > { %s3025_s27 = scalar_lea.vmem %s3024_s5, 2048  ;;  %p3026_p1 = scmp.lt.s32.totalorder %s471_s8, %s3024_s5 }
  0x52   : > { %p3021_p3 = pnand %p3019_p2, %p3007_p0  ;;  %p3027_p4 = scmp.lt.s32.totalorder %s3025_s27, %s3018_s9 }
  0x54   : > { %p3022_p6 = pneg %p3021_p3  ;;  %p3028_p8 = por %p3027_p4, %p3026_p1 }
  0x56   : > { %p3029_p9 = pnand %p3028_p8, %p3022_p6 }
  0x58   : > { %3032 = shalt.err (!%p3029_p9)
}
  0x59   : > { %2828 = dma.hbm_to_vmem [thread:$0]  (!%p3357_p13), %s2216_s24, 1024, %s471_s8, %s456_s7  }
  0x5a   : > { %s477_s11 = sand.u32 1, %s3141_s12   ;;  %s2227_s13 = scalar_lea.hbm %s3364_s3, 4096 }
  0x5b   : > { %s481_s21 = scalar_lea.vmem [#allocation8], %s3342_s22  ;;  %s478_s23 = scalar_lea.sflag [#allocation9], %s477_s11 }
  0x5c   : > { %s494_s26 = sshll.u32 %s481_s21, 4  ;;  %s3149_s9 = smov [#allocation8]   ;;  %s495_s26 = int_to_ptr.vmem [resolvable:$true] %s494_s26 }
  0x5d   : > { %s3047_s6 = scalar_lea.vmem %s495_s26, 1024  ;;  %s3052_s4 = sshll.u32 %s3149_s9, 4  ;;  %s3053_s4 = int_to_ptr.vmem [resolvable:$false] %s3052_s4 }
  0x5e   : > { %p3048_p10 = scmp.ne.s32.totalorder %s495_s26, %s3047_s6  ;;  %s3054_s5 = scalar_lea.vmem %s3053_s4, 2048 }
  0x5f   : > { %p3055_p11 = scmp.lt.s32.totalorder %s495_s26, %s3053_s4  ;;  %p3056_p2 = scmp.lt.s32.totalorder %s3054_s5, %s3047_s6 }
  0x60   : > { %p3050_p7 = pnand %p3048_p10, %p3007_p0 }
  0x61   : > { %p3057_p3 = por %p3056_p2, %p3055_p11 }
  0x62   : > { %p3051_p12 = pneg %p3050_p7 }
  0x64   : > { %p3058_p6 = pnand %p3057_p3, %p3051_p12 }
  0x66   : > { %3061 = shalt.err (!%p3058_p6)
}
  0x67   : > { %2831 = dma.hbm_to_vmem [thread:$0]  (!%p3357_p13), %s2227_s13, 1024, %s495_s26, %s478_s23  }
  0x68   : > { %512 = sbr.rel (%p3283_p5) target bundleno = 1444 (0x5a4), region = 72  ;;  %s514_s8 = sand.u32 (!%p3283_p5), 1, %s3117_s28  }
  0x69   : > { %s3384_s22 = sshll.u32 (!%p3283_p5), %s514_s8, 6  ;;  %s515_s24 = scalar_lea.sflag (!%p3283_p5), [#allocation7], %s514_s8 }
  0x6a   : > { %s518_s3 = scalar_lea.vmem (!%p3283_p5), [#allocation6], %s3384_s22  ;;  %p3733_p0 = scmp.ne.s32.totalorder (!%p3283_p5), %s3724_s19, 0 }
  0x6d   : > { %3096 = dma.done.wait (%p3733_p0), %s515_s24, 1024  }
  0x6e   : > { %3098 = vsyncadd (%p3733_p0), %s515_s24, 4294966272  ;;  %s3734_s7 = sadd.s32 4294967295, %s3141_s12   ;;  %s3394_s27 = scalar_lea.vmem [#allocation8], %s3384_s22 }
  0x6f   : > { %s523_s10 = sand.u32 1, %s3734_s7  }
  0x70   : > { %s524_s20 = scalar_lea.sflag [#allocation9], %s523_s10 }
  0x71   : > { %3100 = dma.done.wait (%p3733_p0), %s524_s20, 1024  }
  0x72   : > { %3102 = vsyncadd (%p3733_p0), %s524_s20, 4294966272  ;;  %p3735_p5 = scmp.ne.s32.totalorder %s3723_s18, 0 }
  0x74   : > { %3104 = dma.done.wait (%p3735_p5), [#allocation9], 16384  }
  0x75   : > { %3106 = vsyncadd (%p3735_p5), [#allocation9], 4294950912 }
  0x76   : > { %3108 = dma.done.wait (%p3735_p5), [#allocation12], 18432  }
  0x77   : > { %3110 = vsyncadd (%p3735_p5), [#allocation12], 4294948864  ;;  %p593_p13 = scmp.lt.s32.totalorder %s3129_s14, 1  ;;  %p602_p1 = scmp.eq.s32.totalorder %s3125_s30, 0 }
  0x78   : > { %s3736_s23 = sld [smem:[#allocation28_spill]]  ;;  %vm610_vm0 = vcmask (%p602_p1), 0   ;;  %v3150_v1 = vmov (%p602_p1), 0.0  }
  0x79   : > { %s3759_s14 = smov (!%p593_p13, %s3129_s14), 1  ;;  %608 = vst [vmem:[#allocation2] sm:$0xff] (%p602_p1), %v3150_v1  ;;  %609 = vst [vmem:[#allocation3] sm:$0xff] (%p602_p1), %v3150_v1 }
  0x7a   : > { %s598_s13 = scalar_lea.vmem %s3694_s2, %s3759_s14  ;;  %607 = sbr.rel (!%p602_p1) target bundleno = 127 (0x7f), region = 96  ;;  %611 = vst.msk [vmem:[#allocation4] sm:$0x1] (%p602_p1), %vm610_vm0, %v3150_v1 }
  0x7e   : > { %s601_s6 = scalar_lea.vmem %s3736_s23, %s3759_s14 }
  0x7f PF: > { %v616_v2 = vld [vmem:[%s518_s3] ss:$8 sm:$0xf]  ;;  %v621_v3 = vld [vmem:[%s598_s13] sm:$0x1]  ;;  %p2352_p4 = scmp.ne.s32.totalorder %s3125_s30, 0 }
  0x80   : > { %v615_v4 = vld [vmem:[#allocation2] sm:$0xff] }
  0x81   : > { %v617_v5 = vld [vmem:[%s518_s3] ss:$8 sm:$0xf0] }
  0x82   : > { %v618_v6 = vor.u32 %v617_v5, %v616_v2  ;;  %624 = sbr.rel (%p2352_p4) target bundleno = 278 (0x116), region = 104 }
  0x84   : > { %v619_v7 = vadd.f32 %v618_v6, %v615_v4 }
  0x86   : > { %620 = vst [vmem:[#allocation2] sm:$0xff] %v619_v7 }
  0x87   : > { %vm626_vm1 = vcmask 57344   ;;  %v625_v9 = vld [vmem:[#allocation4] sm:$0x1]  ;;  %vm631_vm2 = vcmask 0  }
  0x88   : > { %v627_v8 = vsel %vm626_vm1, %v621_v3, 0.0 }
  0x89   : > { %628 = vadd.xlane.f32.xlu0 %v627_v8 }
 0x112   : > { %v629_v10 = vpop.xlane.xlu0 %628 }
 0x113   : > { %v630_v11 = vadd.f32 %v629_v10, %v625_v9 }
 0x115   : > { %632 = vst.msk [vmem:[#allocation4] sm:$0x1] %vm631_vm2, %v630_v11 }
 0x116 PF: > { %v634_v12 = vld [vmem:[%s3394_s27 + $0x8] sm:$0xff]  ;;  %v636_v13 = vld [vmem:[%s3394_s27 + $0x18] sm:$0xff]  ;;  %v633_v14 = vld [vmem:[%s3394_s27] sm:$0xff]  ;;  %vm642_vm3 = vcmask 64512   ;;  %v3151_v16 = vmov 0.0   ;;  %p990_p8 = scmp.eq.s32.totalorder %s3125_s30, 3  ;;  %v945_v23 = vlaneseq }
 0x117   : > { %676 = vmatprep.subr.mxu0 %v634_v12  ;;  %747 = vmatprep.subr.mxu1 %v636_v13  ;;  %v635_v15 = vld [vmem:[%s3394_s27 + $0x10] sm:$0xff]  ;;  %v638_v17 = vld [vmem:[%s3394_s27 + $0x28] sm:$0xff]  ;;  %v640_v18 = vld [vmem:[%s3394_s27 + $0x38] sm:$0xff]  ;;  %v3152_v21 = vmov 1966171168   ;;  %v3153_v53 = vmov (%p990_p8), 0  }
 0x118   : > { %677 = vmatpush1.msra.mxu0 %v633_v14  ;;  %710 = vmatprep.mubr.f32.mxu0 %v3151_v16  ;;  %v637_v19 = vld [vmem:[%s3394_s27 + $0x20] sm:$0xff]  ;;  %v639_v20 = vld [vmem:[%s3394_s27 + $0x30] sm:$0xff]  ;;  %v943_v22 = vunpack.c.l.s4 %v3152_v21  ;;  %v3435_v25 = vshrl.u32 %v945_v23, 7  ;;  %v1042_v51 = vld [vmem:[#allocation10 + $0xf8] sm:$0xff] (%p990_p8)  ;;  %s3737_s9 = sld [smem:[#allocation21_spill]] (%p990_p8)  ;;  %vm3155_vm4 = vmmov (%p990_p8), 0  }
 0x119   : > { %748 = vmatpush1.msra.mxu1 %v635_v15  ;;  %781 = vmatprep.mubr.f32.mxu1 %v3151_v16  ;;  %v641_v47 = vld [vmem:[#allocation3] sm:$0xff]  ;;  %v1040_v61 = vld [vmem:[#allocation10 + $0xe8] sm:$0xff] (%p990_p8)  ;;  %v1039_v1 = vld [vmem:[#allocation10 + $0xe0] sm:$0xff] (%p990_p8)  ;;  %s3738_s26 = sld [smem:[#allocation20_spill]] (%p990_p8)  ;;  %vm2182_vm5 = vcmask (%p990_p8), 0  }
 0x11a   : > { %2353 = vmatmul.mubr.msk.f32.vlgmr.msra.gmra.mxu0 %vm642_vm3, %v621_v3  ;;  %2354 = vmatmul.mubr.msk.f32.vlgmr.msra.gmra.mxu1 %vm642_vm3, %v621_v3  ;;  %v944_v24 = vunpack.c.0.s8 %v943_v22  ;;  %v1074_v52 = vld [vmem:[#allocation10 + $0x1f8] sm:$0xff] (%p990_p8)  ;;  %v1041_v57 = vld [vmem:[#allocation10 + $0xf0] sm:$0xff] (%p990_p8)  ;;  %v1072_v62 = vld [vmem:[#allocation10 + $0x1e8] sm:$0xff] (%p990_p8)  ;;  %s3739_s18 = sld [smem:[#allocation27_spill]] (%p990_p8) }
 0x11b   : > { %818 = vmatprep.subr.mxu0 %v638_v17  ;;  %889 = vmatprep.subr.mxu1 %v640_v18  ;;  %v1026_v55 = vld [vmem:[#allocation10 + $0x78] sm:$0xff] (%p990_p8)  ;;  %v1073_v58 = vld [vmem:[#allocation10 + $0x1f0] sm:$0xff] (%p990_p8)  ;;  %v1024_v63 = vld [vmem:[#allocation10 + $0x68] sm:$0xff] (%p990_p8)  ;;  %s3740_s19 = sld [smem:[#allocation24_spill]] (%p990_p8) }
 0x11c   : > { %819 = vmatpush1.msra.mxu0 %v637_v19  ;;  %890 = vmatpush1.msra.mxu1 %v639_v20  ;;  %v947_v28 = vsub.s32 %v944_v24, %v3435_v25  ;;  %v995_v50 = vld [vmem:[#allocation4] sm:$0x1] (%p990_p8)  ;;  %v1025_v59 = vld [vmem:[#allocation10 + $0x70] sm:$0xff] (%p990_p8)  ;;  %v1056_v0 = vld [vmem:[#allocation10 + $0x168] sm:$0xff] (%p990_p8)  ;;  %s3741_s5 = sld [smem:[#allocation22_spill]] (%p990_p8) }
 0x11d   : > { %852 = vmatprep.mubr.f32.mxu0 %v3151_v16  ;;  %923 = vmatprep.mubr.f32.mxu1 %v3151_v16  ;;  %v996_v54 = vmax.f32 (%p990_p8), %v995_v50, 1.0  ;;  %v1058_v56 = vld [vmem:[#allocation10 + $0x178] sm:$0xff] (%p990_p8)  ;;  %v1057_v60 = vld [vmem:[#allocation10 + $0x170] sm:$0xff] (%p990_p8)  ;;  %v1071_v2 = vld [vmem:[#allocation10 + $0x1e0] sm:$0xff] (%p990_p8)  ;;  %s3742_s24 = sld [smem:[#allocation26_spill]] (%p990_p8) }
 0x11e   : > { %2355 = vmatmul.mubr.msk.f32.vlgmr.msra.gmra.mxu0 %vm642_vm3, %v621_v3  ;;  %2356 = vmatmul.mubr.msk.f32.vlgmr.msra.gmra.mxu1 %vm642_vm3, %v621_v3  ;;  %v1023_v3 = vld [vmem:[#allocation10 + $0x60] sm:$0xff] (%p990_p8)  ;;  %v1038_v5 = vld [vmem:[#allocation10 + $0xd8] sm:$0xff] (%p990_p8)  ;;  %v1037_v9 = vld [vmem:[#allocation10 + $0xd0] sm:$0xff] (%p990_p8) }
 0x11f   : > { %2914 = vset.pattern.permute.xlu0 (%p990_p8), %v3153_v53  ;;  %2363 = vmatprep.subr.mxu0 (%p990_p8), %v1042_v51  ;;  %v1055_v4 = vld [vmem:[#allocation10 + $0x160] sm:$0xff] (%p990_p8)  ;;  %v1070_v6 = vld [vmem:[#allocation10 + $0x1d8] sm:$0xff] (%p990_p8)  ;;  %v1069_v10 = vld [vmem:[#allocation10 + $0x1d0] sm:$0xff] (%p990_p8) }
 0x120   : > { %2398 = vmatprep.subr.mxu1 (%p990_p8), %v1074_v52  ;;  %2364 = vmatpush3.msra.mxu0 (%p990_p8), %v1026_v55  ;;  %v1022_v7 = vld [vmem:[#allocation10 + $0x58] sm:$0xff] (%p990_p8)  ;;  %v1021_v11 = vld [vmem:[#allocation10 + $0x50] sm:$0xff] (%p990_p8)  ;;  %v1036_v13 = vld [vmem:[#allocation10 + $0xc8] sm:$0xff] (%p990_p8) }
 0x121   : > { %1000 = vperm.xlu0 (%p990_p8), %2914, %v996_v54   ;;  %2399 = vmatpush3.msra.mxu1 (%p990_p8), %v1058_v56  ;;  %v1054_v8 = vld [vmem:[#allocation10 + $0x158] sm:$0xff] (%p990_p8)  ;;  %v1053_v12 = vld [vmem:[#allocation10 + $0x150] sm:$0xff] (%p990_p8)  ;;  %v1068_v14 = vld [vmem:[#allocation10 + $0x1c8] sm:$0xff] (%p990_p8)  ;;  %v3441_v56 = vsub.s32 (%p990_p8), 0, %v3435_v25 }
 0x122   : > { %2365 = vmatprep.subr.mxu0 (%p990_p8), %v1041_v57  ;;  %2400 = vmatprep.subr.mxu1 (%p990_p8), %v1073_v58  ;;  %v1020_v15 = vld [vmem:[#allocation10 + $0x48] sm:$0xff] (%p990_p8)  ;;  %v1035_v17 = vld [vmem:[#allocation10 + $0xc0] sm:$0xff] (%p990_p8)  ;;  %v1034_v21 = vld [vmem:[#allocation10 + $0xb8] sm:$0xff] (%p990_p8) }
 0x123   : > { %2366 = vmatpush3.msra.mxu0 (%p990_p8), %v1025_v59  ;;  %2401 = vmatpush3.msra.mxu1 (%p990_p8), %v1057_v60  ;;  %v1052_v16 = vld [vmem:[#allocation10 + $0x148] sm:$0xff] (%p990_p8)  ;;  %v1067_v18 = vld [vmem:[#allocation10 + $0x1c0] sm:$0xff] (%p990_p8)  ;;  %v1066_v22 = vld [vmem:[#allocation10 + $0x1b8] sm:$0xff] (%p990_p8)  ;;  %v1147_v60 = vsub.s32 (%p990_p8), 1, %v3435_v25 }
 0x124   : > { %2367 = vmatprep.subr.mxu0 (%p990_p8), %v1040_v61  ;;  %2402 = vmatprep.subr.mxu1 (%p990_p8), %v1072_v62  ;;  %v1019_v19 = vld [vmem:[#allocation10 + $0x40] sm:$0xff] (%p990_p8)  ;;  %v1018_v23 = vld [vmem:[#allocation10 + $0x38] sm:$0xff] (%p990_p8)  ;;  %v1155_v61 = vsub.s32 (%p990_p8), 3, %v3435_v25  ;;  %v1151_v62 = vsub.s32 (%p990_p8), 2, %v3435_v25 }
 0x125   : > { %2368 = vmatpush3.msra.mxu0 (%p990_p8), %v1024_v63  ;;  %2403 = vmatpush3.msra.mxu1 (%p990_p8), %v1056_v0  ;;  %v1051_v20 = vld [vmem:[#allocation10 + $0x140] sm:$0xff] (%p990_p8)  ;;  %v1050_v24 = vld [vmem:[#allocation10 + $0x138] sm:$0xff] (%p990_p8) }
 0x126   : > { %2369 = vmatprep.subr.mxu0 (%p990_p8), %v1039_v1  ;;  %2404 = vmatprep.subr.mxu1 (%p990_p8), %v1071_v2  ;;  %v1027_v50 = vld [vmem:[#allocation10 + $0x80] sm:$0xff] (%p990_p8)  ;;  %v1106_v54 = vld [vmem:[#allocation10 + $0x2f8] sm:$0xff] (%p990_p8)  ;;  %v1163_v1 = vsub.s32 (%p990_p8), 5, %v3435_v25  ;;  %v1171_v2 = vsub.s32 (%p990_p8), 7, %v3435_v25 }
 0x127   : > { %2370 = vmatpush3.msra.mxu0 (%p990_p8), %v1023_v3  ;;  %2405 = vmatpush3.msra.mxu1 (%p990_p8), %v1055_v4  ;;  %v1059_v51 = vld [vmem:[#allocation10 + $0x180] sm:$0xff] (%p990_p8)  ;;  %v1138_v55 = vld [vmem:[#allocation10 + $0x3f8] sm:$0xff] (%p990_p8) }
 0x128   : > { %2371 = vmatprep.subr.mxu0 (%p990_p8), %v1038_v5  ;;  %2406 = vmatprep.subr.mxu1 (%p990_p8), %v1070_v6  ;;  %v1011_v52 = vld [vmem:[#allocation10] sm:$0xff] (%p990_p8) }
 0x129   : > { %2372 = vmatpush3.msra.mxu0 (%p990_p8), %v1022_v7  ;;  %2407 = vmatpush3.msra.mxu1 (%p990_p8), %v1054_v8  ;;  %v1043_v53 = vld [vmem:[#allocation10 + $0x100] sm:$0xff] (%p990_p8)  ;;  %v1090_v7 = vld [vmem:[#allocation10 + $0x278] sm:$0xff] (%p990_p8) }
 0x12a   : > { %2373 = vmatprep.subr.mxu0 (%p990_p8), %v1037_v9  ;;  %2408 = vmatprep.subr.mxu1 (%p990_p8), %v1069_v10  ;;  %v1122_v8 = vld [vmem:[#allocation10 + $0x378] sm:$0xff] (%p990_p8)  ;;  %v1105_v9 = vld [vmem:[#allocation10 + $0x2f0] sm:$0xff] (%p990_p8) }
 0x12b   : > { %2374 = vmatpush3.msra.mxu0 (%p990_p8), %v1021_v11  ;;  %2409 = vmatpush3.msra.mxu1 (%p990_p8), %v1053_v12  ;;  %v1137_v11 = vld [vmem:[#allocation10 + $0x3f0] sm:$0xff] (%p990_p8) }
 0x12c   : > { %2375 = vmatprep.subr.mxu0 (%p990_p8), %v1036_v13  ;;  %2410 = vmatprep.subr.mxu1 (%p990_p8), %v1068_v14  ;;  %v1089_v13 = vld [vmem:[#allocation10 + $0x270] sm:$0xff] (%p990_p8) }
 0x12d   : > { %2376 = vmatpush3.msra.mxu0 (%p990_p8), %v1020_v15  ;;  %2411 = vmatpush3.msra.mxu1 (%p990_p8), %v1052_v16  ;;  %v1121_v14 = vld [vmem:[#allocation10 + $0x370] sm:$0xff] (%p990_p8)  ;;  %v1104_v15 = vld [vmem:[#allocation10 + $0x2e8] sm:$0xff] (%p990_p8) }
 0x12e   : > { %2377 = vmatprep.subr.mxu0 (%p990_p8), %v1035_v17  ;;  %2412 = vmatprep.subr.mxu1 (%p990_p8), %v1067_v18  ;;  %v1136_v16 = vld [vmem:[#allocation10 + $0x3e8] sm:$0xff] (%p990_p8) }
 0x12f   : > { %2378 = vmatpush3.msra.mxu0 (%p990_p8), %v1019_v19  ;;  %2413 = vmatpush3.msra.mxu1 (%p990_p8), %v1051_v20  ;;  %v1088_v17 = vld [vmem:[#allocation10 + $0x268] sm:$0xff] (%p990_p8)  ;;  %v1103_v19 = vld [vmem:[#allocation10 + $0x2e0] sm:$0xff] (%p990_p8) }
 0x130   : > { %2379 = vmatprep.subr.mxu0 (%p990_p8), %v1034_v21  ;;  %2414 = vmatprep.subr.mxu1 (%p990_p8), %v1066_v22  ;;  %v1120_v18 = vld [vmem:[#allocation10 + $0x368] sm:$0xff] (%p990_p8)  ;;  %v1135_v20 = vld [vmem:[#allocation10 + $0x3e0] sm:$0xff] (%p990_p8) }
 0x131   : > { %2380 = vmatpush3.msra.mxu0 (%p990_p8), %v1018_v23  ;;  %2415 = vmatpush3.msra.mxu1 (%p990_p8), %v1050_v24  ;;  %v1087_v21 = vld [vmem:[#allocation10 + $0x260] sm:$0xff] (%p990_p8)  ;;  %v1102_v23 = vld [vmem:[#allocation10 + $0x2d8] sm:$0xff] (%p990_p8) }
 0x132   : > { %v1119_v22 = vld [vmem:[#allocation10 + $0x360] sm:$0xff] (%p990_p8)  ;;  %v1134_v24 = vld [vmem:[#allocation10 + $0x3d8] sm:$0xff] (%p990_p8) }
 0x19c   : > { %v1001_v57 = vpop.permute.xlu0 (%p990_p8), %1000 }
 0x19d   : > { %v1006_v58 = vrot.slane (%p990_p8), %v1001_v57, %v3441_v56  ;;  %v1094_v57 = vld [vmem:[#allocation10 + $0x298] sm:$0xff] (%p990_p8) }
 0x19f   : > { %2915 = vrcp.f32 (%p990_p8), %v1006_v58  ;;  %v1126_v58 = vld [vmem:[#allocation10 + $0x398] sm:$0xff] (%p990_p8) }
 0x1ac   : > { %v2916_v63 = vpop.eup (%p990_p8), %2915 }
 0x1da   : > { %v712_v26 = vpop.f32.mrf.mxu0  ;;  %v783_v27 = vpop.f32.mrf.mxu1 }
 0x1dc   : > { %v714_v29 = vpop.f32.mrf.mxu0  ;;  %v785_v30 = vpop.f32.mrf.mxu1 }
 0x1dd   : > { %v938_v31 = vcombine.low %v712_v26, %v714_v29  ;;  %v939_v32 = vcombine.low %v783_v27, %v785_v30  ;;  %v1033_v26 = vld [vmem:[#allocation10 + $0xb0] sm:$0xff] (%p990_p8)  ;;  %v1032_v30 = vld [vmem:[#allocation10 + $0xa8] sm:$0xff] (%p990_p8) }
 0x1de   : > { %v854_v33 = vpop.f32.mrf.mxu0  ;;  %v925_v34 = vpop.f32.mrf.mxu1  ;;  %v1065_v27 = vld [vmem:[#allocation10 + $0x1b0] sm:$0xff] (%p990_p8)  ;;  %2381 = vmatprep.subr.mxu0 (%p990_p8), %v1033_v26  ;;  %v1086_v26 = vld [vmem:[#allocation10 + $0x258] sm:$0xff] (%p990_p8) }
 0x1df   : > { %v948_v35 = vrot.slane %v938_v31, %v947_v28  ;;  %v955_v36 = vrot.slane %v939_v32, %v947_v28  ;;  %v1049_v29 = vld [vmem:[#allocation10 + $0x130] sm:$0xff] (%p990_p8)  ;;  %v1064_v31 = vld [vmem:[#allocation10 + $0x1a8] sm:$0xff] (%p990_p8)  ;;  %2416 = vmatprep.subr.mxu1 (%p990_p8), %v1065_v27  ;;  %v1118_v27 = vld [vmem:[#allocation10 + $0x358] sm:$0xff] (%p990_p8) }
 0x1e0   : > { %v856_v37 = vpop.f32.mrf.mxu0  ;;  %v927_v38 = vpop.f32.mrf.mxu1  ;;  %v1016_v32 = vld [vmem:[#allocation10 + $0x28] sm:$0xff] (%p990_p8)  ;;  %2417 = vmatpush3.msra.mxu1 (%p990_p8), %v1049_v29  ;;  %v1133_v29 = vld [vmem:[#allocation10 + $0x3d0] sm:$0xff] (%p990_p8) }
 0x1e1   : > { %v940_v39 = vcombine.low %v854_v33, %v856_v37  ;;  %v941_v40 = vcombine.low %v925_v34, %v927_v38  ;;  %v970_v41 = vcombine.low %v948_v35, %v955_v36  ;;  %v1048_v33 = vld [vmem:[#allocation10 + $0x128] sm:$0xff] (%p990_p8)  ;;  %v1031_v34 = vld [vmem:[#allocation10 + $0xa0] sm:$0xff] (%p990_p8)  ;;  %2418 = vmatprep.subr.mxu1 (%p990_p8), %v1064_v31  ;;  %v1030_v38 = vld [vmem:[#allocation10 + $0x98] sm:$0xff] (%p990_p8) }
 0x1e2   : > { %v1063_v35 = vld [vmem:[#allocation10 + $0x1a0] sm:$0xff] (%p990_p8)  ;;  %2419 = vmatpush3.msra.mxu1 (%p990_p8), %v1048_v33  ;;  %v1117_v31 = vld [vmem:[#allocation10 + $0x350] sm:$0xff] (%p990_p8)  ;;  %v1132_v33 = vld [vmem:[#allocation10 + $0x3c8] sm:$0xff] (%p990_p8) }
 0x1e3   : > { %v962_v42 = vrot.slane %v940_v39, %v947_v28  ;;  %v969_v43 = vrot.slane %v941_v40, %v947_v28  ;;  %v978_v45 = vrot.slane %v970_v41, %v947_v28  ;;  %v1015_v36 = vld [vmem:[#allocation10 + $0x20] sm:$0xff] (%p990_p8)  ;;  %v1062_v39 = vld [vmem:[#allocation10 + $0x198] sm:$0xff] (%p990_p8)  ;;  %2420 = vmatprep.subr.mxu1 (%p990_p8), %v1063_v35  ;;  %v1116_v35 = vld [vmem:[#allocation10 + $0x348] sm:$0xff] (%p990_p8) }
 0x1e4   : > { %v1047_v37 = vld [vmem:[#allocation10 + $0x120] sm:$0xff] (%p990_p8)  ;;  %v1014_v40 = vld [vmem:[#allocation10 + $0x18] sm:$0xff] (%p990_p8) }
 0x1e5   : > { %v971_v44 = vcombine.low %v962_v42, %v969_v43  ;;  %v1046_v41 = vld [vmem:[#allocation10 + $0x118] sm:$0xff] (%p990_p8)  ;;  %2421 = vmatpush3.msra.mxu1 (%p990_p8), %v1047_v37  ;;  %v1029_v42 = vld [vmem:[#allocation10 + $0x90] sm:$0xff] (%p990_p8)  ;;  %v1131_v37 = vld [vmem:[#allocation10 + $0x3c0] sm:$0xff] (%p990_p8) }
 0x1e6   : > { %v1061_v43 = vld [vmem:[#allocation10 + $0x190] sm:$0xff] (%p990_p8)  ;;  %2422 = vmatprep.subr.mxu1 (%p990_p8), %v1062_v39  ;;  %v1115_v39 = vld [vmem:[#allocation10 + $0x340] sm:$0xff] (%p990_p8) }
 0x1e7   : > { %v985_v46 = vrot.slane %v971_v44, %v947_v28  ;;  %v1017_v28 = vld [vmem:[#allocation10 + $0x30] sm:$0xff] (%p990_p8)  ;;  %2423 = vmatpush3.msra.mxu1 (%p990_p8), %v1046_v41  ;;  %v1130_v41 = vld [vmem:[#allocation10 + $0x3b8] sm:$0xff] (%p990_p8) }
 0x1e8   : > { %2382 = vmatpush3.msra.mxu0 (%p990_p8), %v1017_v28  ;;  %v1013_v44 = vld [vmem:[#allocation10 + $0x10] sm:$0xff] (%p990_p8)  ;;  %2424 = vmatprep.subr.mxu1 (%p990_p8), %v1061_v43  ;;  %v1114_v43 = vld [vmem:[#allocation10 + $0x338] sm:$0xff] (%p990_p8) }
 0x1e9   : > { %v986_v48 = vcombine.low %v978_v45, %v985_v46  ;;  %994 = sbr.rel (!%p990_p8) target bundleno = 1444 (0x5a4), region = 108  ;;  %2383 = vmatprep.subr.mxu0 (%p990_p8), %v1032_v30  ;;  %v1045_v45 = vld [vmem:[#allocation10 + $0x110] sm:$0xff] (%p990_p8)  ;;  %v1028_v46 = vld [vmem:[#allocation10 + $0x88] sm:$0xff] (%p990_p8) }
 0x1ea   : > { %2384 = vmatpush3.msra.mxu0 (%p990_p8), %v1016_v32  ;;  %2425 = vmatpush3.msra.mxu1 (%p990_p8), %v1045_v45  ;;  %v1101_v28 = vld [vmem:[#allocation10 + $0x2d0] sm:$0xff] (%p990_p8)  ;;  %v1100_v32 = vld [vmem:[#allocation10 + $0x2c8] sm:$0xff] (%p990_p8) }
 0x1eb   : > { %v988_v49 = vadd.f32 %v986_v48, %v641_v47  ;;  %2385 = vmatprep.subr.mxu0 (%p990_p8), %v1031_v34  ;;  %v1060_v47 = vld [vmem:[#allocation10 + $0x188] sm:$0xff] (%p990_p8)  ;;  %v1085_v30 = vld [vmem:[#allocation10 + $0x250] sm:$0xff] (%p990_p8) }
 0x1ec   : > { %2386 = vmatpush3.msra.mxu0 (%p990_p8), %v1015_v36  ;;  %v1012_v48 = vld [vmem:[#allocation10 + $0x8] sm:$0xff] (%p990_p8)  ;;  %2426 = vmatprep.subr.mxu1 (%p990_p8), %v1060_v47  ;;  %v1099_v36 = vld [vmem:[#allocation10 + $0x2c0] sm:$0xff] (%p990_p8)  ;;  %v1129_v45 = vld [vmem:[#allocation10 + $0x3b0] sm:$0xff] (%p990_p8) }
 0x1ed   : > { %989 = vst [vmem:[#allocation3] sm:$0xff] %v988_v49  ;;  %2387 = vmatprep.subr.mxu0 (%p990_p8), %v1030_v38  ;;  %v1044_v49 = vld [vmem:[#allocation10 + $0x108] sm:$0xff] (%p990_p8)  ;;  %v1083_v38 = vld [vmem:[#allocation10 + $0x240] sm:$0xff] (%p990_p8)  ;;  %v1113_v47 = vld [vmem:[#allocation10 + $0x330] sm:$0xff] (%p990_p8) }
 0x1ee   : > { %2388 = vmatpush3.msra.mxu0 %v1014_v40  ;;  %2427 = vmatpush3.msra.mxu1 %v1044_v49  ;;  %v1084_v34 = vld [vmem:[#allocation10 + $0x248] sm:$0xff]  ;;  %v1098_v40 = vld [vmem:[#allocation10 + $0x2b8] sm:$0xff] }
 0x1ef   : > { %2389 = vmatprep.subr.mxu0 %v1029_v42  ;;  %2428 = vmatprep.subr.mxu1 %v1059_v51  ;;  %v1082_v42 = vld [vmem:[#allocation10 + $0x238] sm:$0xff]  ;;  %v1128_v49 = vld [vmem:[#allocation10 + $0x3a8] sm:$0xff] }
 0x1f0   : > { %2390 = vmatpush3.msra.mxu0 %v1013_v44  ;;  %2429 = vmatpush3.msra.mxu1 %v1043_v53  ;;  %v1097_v44 = vld [vmem:[#allocation10 + $0x2b0] sm:$0xff]  ;;  %v1112_v51 = vld [vmem:[#allocation10 + $0x328] sm:$0xff]  ;;  %v1127_v53 = vld [vmem:[#allocation10 + $0x3a0] sm:$0xff] }
 0x1f1   : > { %2391 = vmatprep.subr.mxu0 %v1028_v46  ;;  %2468 = vmatprep.subr.mxu1 %v1138_v55  ;;  %v1081_v46 = vld [vmem:[#allocation10 + $0x230] sm:$0xff]  ;;  %v1111_v55 = vld [vmem:[#allocation10 + $0x320] sm:$0xff] }
 0x1f2   : > { %2392 = vmatpush3.msra.mxu0 %v1012_v48  ;;  %v1096_v48 = vld [vmem:[#allocation10 + $0x2a8] sm:$0xff] }
 0x1f3   : > { %2393 = vmatprep.subr.mxu0 %v1027_v50  ;;  %v1080_v50 = vld [vmem:[#allocation10 + $0x228] sm:$0xff] }
 0x1f4   : > { %2394 = vmatpush3.msra.mxu0 %v1011_v52  ;;  %v997_v59 = vld [vmem:[#allocation3] sm:$0xff]  ;;  %v1095_v52 = vld [vmem:[#allocation10 + $0x2a0] sm:$0xff] }
 0x1f5   : > { %2433 = vmatprep.subr.mxu0 %v1106_v54  ;;  %v3447_v0 = vmul.f32 %v2916_v63, %v997_v59  ;;  %v1079_v54 = vld [vmem:[#allocation10 + $0x220] sm:$0xff]  ;;  %v1078_v59 = vld [vmem:[#allocation10 + $0x218] sm:$0xff] }
 0x1f6   : > { %v1110_v63 = vld [vmem:[#allocation10 + $0x318] sm:$0xff] }
 0x1f7   : > { %v1148_v3 = vrot.slane %v3447_v0, %v1147_v60  ;;  %v1156_v4 = vrot.slane %v3447_v0, %v1155_v61  ;;  %v1144_v5 = vrot.slane %v3447_v0, %v3441_v56  ;;  %v1152_v6 = vrot.slane %v3447_v0, %v1151_v62 }
 0x1f8   : > { %v1164_v10 = vrot.slane %v3447_v0, %v1163_v1  ;;  %v1172_v12 = vrot.slane %v3447_v0, %v1171_v2 }
 0x1f9   : > { %1245 = vmatprep.mubr.f32.mxu0 %v1148_v3  ;;  %1315 = vmatprep.mubr.f32.mxu1 %v1156_v4  ;;  %v1093_v3 = vld [vmem:[#allocation10 + $0x290] sm:$0xff] }
 0x1fa   : > { %1246 = vmatmul.mubr.f32.vlgmr.msra.gmra.mxu0 %v1144_v5  ;;  %1316 = vmatmul.mubr.f32.vlgmr.msra.gmra.mxu1 %v1152_v6  ;;  %v1125_v4 = vld [vmem:[#allocation10 + $0x390] sm:$0xff] }
 0x1fb   : > { %2434 = vmatpush3.msra.mxu0 %v1090_v7  ;;  %2469 = vmatpush3.msra.mxu1 %v1122_v8  ;;  %v1077_v5 = vld [vmem:[#allocation10 + $0x210] sm:$0xff]  ;;  %v1092_v7 = vld [vmem:[#allocation10 + $0x288] sm:$0xff] }
 0x1fc   : > { %2435 = vmatprep.subr.mxu0 %v1105_v9  ;;  %1385 = vmatprep.mubr.f32.mxu0 %v1164_v10  ;;  %v1109_v6 = vld [vmem:[#allocation10 + $0x310] sm:$0xff]  ;;  %v1124_v8 = vld [vmem:[#allocation10 + $0x388] sm:$0xff] }
 0x1fd   : > { %2470 = vmatprep.subr.mxu1 %v1137_v11  ;;  %1455 = vmatprep.mubr.f32.mxu1 %v1172_v12  ;;  %v1076_v9 = vld [vmem:[#allocation10 + $0x208] sm:$0xff]  ;;  %v1159_v11 = vsub.s32 4, %v3435_v25  ;;  %v1167_v12 = vsub.s32 6, %v3435_v25  ;;  %v2011_v25 = vld [vmem:[#allocation13 + $0x60] sm:$0xff] }
 0x1fe   : > { %2436 = vmatpush3.msra.mxu0 %v1089_v13  ;;  %2471 = vmatpush3.msra.mxu1 %v1121_v14  ;;  %v1108_v10 = vld [vmem:[#allocation10 + $0x308] sm:$0xff]  ;;  %v1091_v13 = vld [vmem:[#allocation10 + $0x280] sm:$0xff] }
 0x1ff   : > { %2437 = vmatprep.subr.mxu0 %v1104_v15  ;;  %2472 = vmatprep.subr.mxu1 %v1136_v16  ;;  %v1123_v14 = vld [vmem:[#allocation10 + $0x380] sm:$0xff] }
 0x200   : > { %2438 = vmatpush3.msra.mxu0 %v1088_v17  ;;  %2473 = vmatpush3.msra.mxu1 %v1120_v18  ;;  %v1075_v15 = vld [vmem:[#allocation10 + $0x200] sm:$0xff]  ;;  %v1160_v17 = vrot.slane %v3447_v0, %v1159_v11  ;;  %v1168_v18 = vrot.slane %v3447_v0, %v1167_v12  ;;  %v1563_v0 = vld [vmem:[#allocation11 + $0x70] sm:$0xff] }
 0x201   : > { %2439 = vmatprep.subr.mxu0 %v1103_v19  ;;  %2474 = vmatprep.subr.mxu1 %v1135_v20  ;;  %v1107_v16 = vld [vmem:[#allocation10 + $0x300] sm:$0xff]  ;;  %v1580_v20 = vld [vmem:[#allocation11 + $0xf8] sm:$0xff] }
 0x202   : > { %2440 = vmatpush3.msra.mxu0 %v1087_v21  ;;  %2475 = vmatpush3.msra.mxu1 %v1119_v22  ;;  %v1476_v19 = vld [vmem:[%s3737_s9 + $0x78] sm:$0xff]  ;;  %v3154_v21 = vmov 0.0   ;;  %v1475_v22 = vld [vmem:[%s3737_s9 + $0x70] sm:$0xff] }
 0x203   : > { %2441 = vmatprep.subr.mxu0 %v1102_v23  ;;  %2476 = vmatprep.subr.mxu1 %v1134_v24  ;;  %v1564_v23 = vld [vmem:[#allocation11 + $0x78] sm:$0xff]  ;;  %v1579_v24 = vld [vmem:[#allocation11 + $0xf0] sm:$0xff] }
 0x204   : > { %2442 = vmatpush3.msra.mxu0 %v1086_v26  ;;  %2477 = vmatpush3.msra.mxu1 %v1118_v27  ;;  %v1578_v26 = vld [vmem:[#allocation11 + $0xe8] sm:$0xff]  ;;  %v1474_v27 = vld [vmem:[%s3737_s9 + $0x68] sm:$0xff] }
 0x205   : > { %2443 = vmatprep.subr.mxu0 %v1101_v28  ;;  %2478 = vmatprep.subr.mxu1 %v1133_v29  ;;  %v1562_v28 = vld [vmem:[#allocation11 + $0x68] sm:$0xff]  ;;  %v1577_v29 = vld [vmem:[#allocation11 + $0xe0] sm:$0xff] }
 0x206   : > { %2444 = vmatpush3.msra.mxu0 %v1085_v30  ;;  %2479 = vmatpush3.msra.mxu1 %v1117_v31  ;;  %v1473_v30 = vld [vmem:[%s3737_s9 + $0x60] sm:$0xff]  ;;  %v1561_v31 = vld [vmem:[#allocation11 + $0x60] sm:$0xff] }
 0x207   : > { %2445 = vmatprep.subr.mxu0 %v1100_v32  ;;  %2480 = vmatprep.subr.mxu1 %v1132_v33  ;;  %v1576_v32 = vld [vmem:[#allocation11 + $0xd8] sm:$0xff]  ;;  %v1472_v33 = vld [vmem:[%s3737_s9 + $0x58] sm:$0xff] }
 0x208   : > { %2446 = vmatpush3.msra.mxu0 %v1084_v34  ;;  %2481 = vmatpush3.msra.mxu1 %v1116_v35  ;;  %v1560_v34 = vld [vmem:[#allocation11 + $0x58] sm:$0xff]  ;;  %v1575_v35 = vld [vmem:[#allocation11 + $0xd0] sm:$0xff] }
 0x209   : > { %2447 = vmatprep.subr.mxu0 %v1099_v36  ;;  %2482 = vmatprep.subr.mxu1 %v1131_v37  ;;  %v1471_v36 = vld [vmem:[%s3737_s9 + $0x50] sm:$0xff]  ;;  %v1559_v37 = vld [vmem:[#allocation11 + $0x50] sm:$0xff] }
 0x20a   : > { %2448 = vmatpush3.msra.mxu0 %v1083_v38  ;;  %2483 = vmatpush3.msra.mxu1 %v1115_v39  ;;  %v1574_v38 = vld [vmem:[#allocation11 + $0xc8] sm:$0xff]  ;;  %v1470_v39 = vld [vmem:[%s3737_s9 + $0x48] sm:$0xff] }
 0x20b   : > { %2449 = vmatprep.subr.mxu0 %v1098_v40  ;;  %2484 = vmatprep.subr.mxu1 %v1130_v41  ;;  %v1558_v40 = vld [vmem:[#allocation11 + $0x48] sm:$0xff]  ;;  %v1573_v41 = vld [vmem:[#allocation11 + $0xc0] sm:$0xff] }
 0x20c   : > { %2450 = vmatpush3.msra.mxu0 %v1082_v42  ;;  %2485 = vmatpush3.msra.mxu1 %v1114_v43  ;;  %v1469_v42 = vld [vmem:[%s3737_s9 + $0x40] sm:$0xff]  ;;  %v1557_v43 = vld [vmem:[#allocation11 + $0x40] sm:$0xff] }
 0x20d   : > { %2451 = vmatprep.subr.mxu0 %v1097_v44  ;;  %2486 = vmatprep.subr.mxu1 %v1129_v45  ;;  %v1572_v44 = vld [vmem:[#allocation11 + $0xb8] sm:$0xff]  ;;  %v1468_v45 = vld [vmem:[%s3737_s9 + $0x38] sm:$0xff] }
 0x20e   : > { %2452 = vmatpush3.msra.mxu0 %v1081_v46  ;;  %2487 = vmatpush3.msra.mxu1 %v1113_v47  ;;  %v1556_v46 = vld [vmem:[#allocation11 + $0x38] sm:$0xff]  ;;  %v1571_v47 = vld [vmem:[#allocation11 + $0xb0] sm:$0xff] }
 0x20f   : > { %2453 = vmatprep.subr.mxu0 %v1096_v48  ;;  %2488 = vmatprep.subr.mxu1 %v1128_v49  ;;  %v1467_v48 = vld [vmem:[%s3737_s9 + $0x30] sm:$0xff]  ;;  %v1555_v49 = vld [vmem:[#allocation11 + $0x30] sm:$0xff] }
 0x210   : > { %2454 = vmatpush3.msra.mxu0 %v1080_v50  ;;  %2489 = vmatpush3.msra.mxu1 %v1112_v51  ;;  %v1570_v50 = vld [vmem:[#allocation11 + $0xa8] sm:$0xff]  ;;  %v1466_v51 = vld [vmem:[%s3737_s9 + $0x28] sm:$0xff] }
 0x211   : > { %2455 = vmatprep.subr.mxu0 %v1095_v52  ;;  %2490 = vmatprep.subr.mxu1 %v1127_v53  ;;  %v1554_v52 = vld [vmem:[#allocation11 + $0x28] sm:$0xff] }
 0x212   : > { %2456 = vmatpush3.msra.mxu0 %v1079_v54  ;;  %2491 = vmatpush3.msra.mxu1 %v1111_v55  ;;  %v1009_v53 = vld [vmem:[#allocation2] sm:$0xff]  ;;  %v1569_v55 = vld [vmem:[#allocation11 + $0xa0] sm:$0xff] }
 0x213   : > { %2457 = vmatprep.subr.mxu0 %v1094_v57  ;;  %2492 = vmatprep.subr.mxu1 %v1126_v58  ;;  %v1465_v54 = vld [vmem:[%s3737_s9 + $0x20] sm:$0xff]  ;;  %2917 = vtanh.f32 %v1009_v53  ;;  %v1464_v57 = vld [vmem:[%s3737_s9 + $0x18] sm:$0xff] }
 0x214   : > { %2458 = vmatpush3.msra.mxu0 %v1078_v59  ;;  %2493 = vmatpush3.msra.mxu1 %v1110_v63  ;;  %v1553_v58 = vld [vmem:[#allocation11 + $0x20] sm:$0xff]  ;;  %v1568_v59 = vld [vmem:[#allocation11 + $0x98] sm:$0xff] }
 0x215   : > { %2459 = vmatprep.subr.mxu0 %v1093_v3  ;;  %2494 = vmatprep.subr.mxu1 %v1125_v4  ;;  %v1463_v63 = vld [vmem:[%s3737_s9 + $0x10] sm:$0xff]  ;;  %v1567_v4 = vld [vmem:[#allocation11 + $0x90] sm:$0xff] }
 0x216   : > { %2460 = vmatpush3.msra.mxu0 %v1077_v5  ;;  %2495 = vmatpush3.msra.mxu1 %v1109_v6  ;;  %v1552_v3 = vld [vmem:[#allocation11 + $0x18] sm:$0xff]  ;;  %v1551_v6 = vld [vmem:[#allocation11 + $0x10] sm:$0xff] }
 0x217   : > { %2461 = vmatprep.subr.mxu0 %v1092_v7  ;;  %2496 = vmatprep.subr.mxu1 %v1124_v8  ;;  %v1462_v5 = vld [vmem:[%s3737_s9 + $0x8] sm:$0xff]  ;;  %v1566_v7 = vld [vmem:[#allocation11 + $0x88] sm:$0xff] }
 0x218   : > { %2462 = vmatpush3.msra.mxu0 %v1076_v9  ;;  %2497 = vmatpush3.msra.mxu1 %v1108_v10  ;;  %v1461_v8 = vld [vmem:[%s3737_s9] sm:$0xff]  ;;  %v1565_v10 = vld [vmem:[#allocation11 + $0x80] sm:$0xff] }
 0x219   : > { %2463 = vmatprep.subr.mxu0 %v1091_v13  ;;  %2498 = vmatprep.subr.mxu1 %v1123_v14  ;;  %v1550_v9 = vld [vmem:[#allocation11 + $0x8] sm:$0xff]  ;;  %v1612_v13 = vld [vmem:[#allocation11 + $0x1f8] sm:$0xff] }
 0x21a   : > { %2464 = vmatpush3.msra.mxu0 %v1075_v15  ;;  %2499 = vmatpush3.msra.mxu1 %v1107_v16  ;;  %v1549_v15 = vld [vmem:[#allocation11] sm:$0xff] }
 0x21b   : > { %1386 = vmatmul.mubr.f32.vlgmr.msra.gmra.mxu0 %v1160_v17  ;;  %1456 = vmatmul.mubr.f32.vlgmr.msra.gmra.mxu1 %v1168_v18  ;;  %v1644_v17 = vld [vmem:[#allocation11 + $0x2f8] sm:$0xff] }
 0x21c   : > { %2694 = vmatprep.subr.mxu0 %v3154_v21  ;;  %2520 = vmatprep.subr.mxu1 %v1580_v20  ;;  %v1643_v20 = vld [vmem:[#allocation11 + $0x2f0] sm:$0xff] }
 0x21d   : > { %2695 = vmatpush3.msra.mxu0 %v1476_v19  ;;  %2521 = vmatpush3.msra.mxu1 %v1564_v23  ;;  %v1628_v19 = vld [vmem:[#allocation11 + $0x278] sm:$0xff]  ;;  %v1642_v23 = vld [vmem:[#allocation11 + $0x2e8] sm:$0xff] }
 0x21e   : > { %2696 = vmatprep.subr.mxu0 %v3154_v21  ;;  %2522 = vmatprep.subr.mxu1 %v1579_v24  ;;  %v1626_v24 = vld [vmem:[#allocation11 + $0x268] sm:$0xff] }
 0x21f   : > { %2697 = vmatpush3.msra.mxu0 %v1475_v22  ;;  %2523 = vmatpush3.msra.mxu1 %v1563_v0  ;;  %v1627_v22 = vld [vmem:[#allocation11 + $0x270] sm:$0xff]  ;;  %v1641_v0 = vld [vmem:[#allocation11 + $0x2e0] sm:$0xff] }
 0x220   : > { %2698 = vmatprep.subr.mxu0 %v3154_v21  ;;  %2524 = vmatprep.subr.mxu1 %v1578_v26  ;;  %v3540_v14 = vpop.eup %2917  ;;  %v1625_v26 = vld [vmem:[#allocation11 + $0x260] sm:$0xff] }
 0x221   : > { %2699 = vmatpush3.msra.mxu0 %v1474_v27  ;;  %2525 = vmatpush3.msra.mxu1 %v1562_v28  ;;  %v1686_v16 = vrot.slane %v3540_v14, %v1147_v60  ;;  %v1682_v18 = vrot.slane %v3540_v14, %v3441_v56  ;;  %v1640_v60 = vld [vmem:[#allocation11 + $0x2d8] sm:$0xff]  ;;  %v1639_v56 = vld [vmem:[#allocation11 + $0x2d0] sm:$0xff] }
 0x222   : > { %2700 = vmatprep.subr.mxu0 %v3154_v21  ;;  %2526 = vmatprep.subr.mxu1 %v1577_v29  ;;  %v1624_v27 = vld [vmem:[#allocation11 + $0x258] sm:$0xff]  ;;  %v1623_v28 = vld [vmem:[#allocation11 + $0x250] sm:$0xff]  ;;  %v1638_v29 = vld [vmem:[#allocation11 + $0x2c8] sm:$0xff] }
 0x223   : > { %2701 = vmatpush3.msra.mxu0 %v1473_v30  ;;  %2527 = vmatpush3.msra.mxu1 %v1561_v31  ;;  %v1622_v30 = vld [vmem:[#allocation11 + $0x248] sm:$0xff]  ;;  %v1637_v31 = vld [vmem:[#allocation11 + $0x2c0] sm:$0xff] }
 0x224   : > { %2702 = vmatprep.subr.mxu0 %v3154_v21  ;;  %2528 = vmatprep.subr.mxu1 %v1576_v32  ;;  %v1621_v32 = vld [vmem:[#allocation11 + $0x240] sm:$0xff] }
 0x225   : > { %2703 = vmatpush3.msra.mxu0 %v1472_v33  ;;  %2529 = vmatpush3.msra.mxu1 %v1560_v34  ;;  %v1636_v33 = vld [vmem:[#allocation11 + $0x2b8] sm:$0xff] }
 0x226   : > { %2704 = vmatprep.subr.mxu0 %v3154_v21  ;;  %2530 = vmatprep.subr.mxu1 %v1575_v35  ;;  %v1620_v34 = vld [vmem:[#allocation11 + $0x238] sm:$0xff]  ;;  %v1635_v35 = vld [vmem:[#allocation11 + $0x2b0] sm:$0xff] }
 0x227   : > { %2705 = vmatpush3.msra.mxu0 %v1471_v36  ;;  %2531 = vmatpush3.msra.mxu1 %v1559_v37  ;;  %v1619_v36 = vld [vmem:[#allocation11 + $0x230] sm:$0xff]  ;;  %v1634_v37 = vld [vmem:[#allocation11 + $0x2a8] sm:$0xff] }
 0x228   : > { %2706 = vmatprep.subr.mxu0 %v3154_v21  ;;  %2532 = vmatprep.subr.mxu1 %v1574_v38  ;;  %v1618_v38 = vld [vmem:[#allocation11 + $0x228] sm:$0xff] }
 0x229   : > { %2707 = vmatpush3.msra.mxu0 %v1470_v39  ;;  %2533 = vmatpush3.msra.mxu1 %v1558_v40  ;;  %v1633_v39 = vld [vmem:[#allocation11 + $0x2a0] sm:$0xff] }
 0x22a   : > { %2708 = vmatprep.subr.mxu0 %v3154_v21  ;;  %2534 = vmatprep.subr.mxu1 %v1573_v41  ;;  %v1617_v40 = vld [vmem:[#allocation11 + $0x220] sm:$0xff]  ;;  %v1632_v41 = vld [vmem:[#allocation11 + $0x298] sm:$0xff] }
 0x22b   : > { %2709 = vmatpush3.msra.mxu0 %v1469_v42  ;;  %2535 = vmatpush3.msra.mxu1 %v1557_v43  ;;  %v1616_v42 = vld [vmem:[#allocation11 + $0x218] sm:$0xff]  ;;  %v1631_v43 = vld [vmem:[#allocation11 + $0x290] sm:$0xff] }
 0x22c   : > { %2710 = vmatprep.subr.mxu0 %v3154_v21  ;;  %2536 = vmatprep.subr.mxu1 %v1572_v44  ;;  %v1615_v44 = vld [vmem:[#allocation11 + $0x210] sm:$0xff] }
 0x22d   : > { %2711 = vmatpush3.msra.mxu0 %v1468_v45  ;;  %2537 = vmatpush3.msra.mxu1 %v1556_v46  ;;  %v1630_v45 = vld [vmem:[#allocation11 + $0x288] sm:$0xff] }
 0x22e   : > { %2712 = vmatprep.subr.mxu0 %v3154_v21  ;;  %2538 = vmatprep.subr.mxu1 %v1571_v47  ;;  %v1614_v46 = vld [vmem:[#allocation11 + $0x208] sm:$0xff]  ;;  %v1629_v47 = vld [vmem:[#allocation11 + $0x280] sm:$0xff] }
 0x22f   : > { %2713 = vmatpush3.msra.mxu0 %v1467_v48  ;;  %2539 = vmatpush3.msra.mxu1 %v1555_v49  ;;  %v1702_v48 = vrot.slane %v3540_v14, %v1163_v1  ;;  %v1613_v49 = vld [vmem:[#allocation11 + $0x200] sm:$0xff]  ;;  %v1139_v1 = vld [vmem:[%s3738_s26] sm:$0x1] }
 0x230   : > { %2714 = vmatprep.subr.mxu0 %v3154_v21  ;;  %2540 = vmatprep.subr.mxu1 %v1570_v50  ;;  %v1698_v50 = vrot.slane %v3540_v14, %v1159_v11 }
 0x231   : > { %2715 = vmatpush3.msra.mxu0 %v1466_v51  ;;  %2541 = vmatpush3.msra.mxu1 %v1554_v52 }
 0x232   : > { %2716 = vmatprep.subr.mxu0 %v3154_v21  ;;  %2542 = vmatprep.subr.mxu1 %v1569_v55 }
 0x233   : > { %2717 = vmatpush3.msra.mxu0 %v1465_v54  ;;  %2543 = vmatpush3.msra.mxu1 %v1553_v58 }
 0x234   : > { %2718 = vmatprep.subr.mxu0 %v3154_v21  ;;  %2544 = vmatprep.subr.mxu1 %v1568_v59 }
 0x235   : > { %2719 = vmatpush3.msra.mxu0 %v1464_v57  ;;  %2545 = vmatpush3.msra.mxu1 %v1552_v3 }
 0x236   : > { %2720 = vmatprep.subr.mxu0 %v3154_v21  ;;  %2546 = vmatprep.subr.mxu1 %v1567_v4 }
 0x237   : > { %2721 = vmatpush3.msra.mxu0 %v1463_v63  ;;  %2547 = vmatpush3.msra.mxu1 %v1551_v6 }
 0x238   : > { %2722 = vmatprep.subr.mxu0 %v3154_v21  ;;  %2548 = vmatprep.subr.mxu1 %v1566_v7 }
 0x239   : > { %2723 = vmatpush3.msra.mxu0 %v1462_v5  ;;  %2549 = vmatpush3.msra.mxu1 %v1550_v9 }
 0x23a   : > { %2724 = vmatprep.subr.mxu0 %v3154_v21  ;;  %2726 = vmatprep.mubr.msk.f32.mxu0 %vm3155_vm4, %v3154_v21 }
 0x23b   : > { %2725 = vmatpush3.msra.mxu0 %v1461_v8  ;;  %2550 = vmatprep.subr.mxu1 %v1565_v10  ;;  %v1694_v8 = vrot.slane %v3540_v14, %v1155_v61  ;;  %v1596_v10 = vld [vmem:[#allocation11 + $0x178] sm:$0xff]  ;;  %v1607_v61 = vld [vmem:[#allocation11 + $0x1d0] sm:$0xff] }
 0x23c   : > { %2555 = vmatprep.subr.mxu0 %v1612_v13  ;;  %2551 = vmatpush3.msra.mxu1 %v1549_v15  ;;  %v1611_v13 = vld [vmem:[#allocation11 + $0x1f0] sm:$0xff] }
 0x23d   : > { %1783 = vmatprep.mubr.f32.mxu1 %v1686_v16  ;;  %2590 = vmatprep.subr.mxu1 %v1644_v17  ;;  %v1595_v15 = vld [vmem:[#allocation11 + $0x170] sm:$0xff]  ;;  %v1610_v16 = vld [vmem:[#allocation11 + $0x1e8] sm:$0xff] }
 0x23e   : > { %1784 = vmatmul.mubr.f32.vlgmr.msra.gmra.mxu1 %v1682_v18  ;;  %v1594_v17 = vld [vmem:[#allocation11 + $0x168] sm:$0xff]  ;;  %v1609_v18 = vld [vmem:[#allocation11 + $0x1e0] sm:$0xff] }
 0x23f   : > { %2591 = vmatpush3.msra.mxu1 %v1628_v19  ;;  %1923 = vmatprep.mubr.f32.mxu1 %v1702_v48  ;;  %v1593_v19 = vld [vmem:[#allocation11 + $0x160] sm:$0xff]  ;;  %v1674_v48 = vld [vmem:[#allocation11 + $0x3e8] sm:$0xff] }
 0x240   : > { %2592 = vmatprep.subr.mxu1 %v1643_v20  ;;  %v1608_v20 = vld [vmem:[#allocation11 + $0x1d8] sm:$0xff] }
 0x241   : > { %2593 = vmatpush3.msra.mxu1 %v1627_v22  ;;  %v1592_v22 = vld [vmem:[#allocation11 + $0x158] sm:$0xff] }
 0x242   : > { %2594 = vmatprep.subr.mxu1 %v1642_v23  ;;  %v1591_v23 = vld [vmem:[#allocation11 + $0x150] sm:$0xff] }
 0x243   : > { %2595 = vmatpush3.msra.mxu1 %v1626_v24  ;;  %v1606_v24 = vld [vmem:[#allocation11 + $0x1c8] sm:$0xff] }
 0x244   : > { %2596 = vmatprep.subr.mxu1 %v1641_v0  ;;  %v1590_v0 = vld [vmem:[#allocation11 + $0x148] sm:$0xff] }
 0x245   : > { %2597 = vmatpush3.msra.mxu1 %v1625_v26  ;;  %v1605_v26 = vld [vmem:[#allocation11 + $0x1c0] sm:$0xff] }
 0x246   : > { %2598 = vmatprep.subr.mxu1 %v1640_v60  ;;  %v1589_v60 = vld [vmem:[#allocation11 + $0x140] sm:$0xff] }
 0x247   : > { %2599 = vmatpush3.msra.mxu1 %v1624_v27  ;;  %v1604_v27 = vld [vmem:[#allocation11 + $0x1b8] sm:$0xff] }
 0x248   : > { %2600 = vmatprep.subr.mxu1 %v1639_v56  ;;  %v1588_v56 = vld [vmem:[#allocation11 + $0x138] sm:$0xff] }
 0x249   : > { %2601 = vmatpush3.msra.mxu1 %v1623_v28  ;;  %v1603_v28 = vld [vmem:[#allocation11 + $0x1b0] sm:$0xff] }
 0x24a   : > { %2602 = vmatprep.subr.mxu1 %v1638_v29  ;;  %v1587_v29 = vld [vmem:[#allocation11 + $0x130] sm:$0xff] }
 0x24b   : > { %2603 = vmatpush3.msra.mxu1 %v1622_v30  ;;  %v1602_v30 = vld [vmem:[#allocation11 + $0x1a8] sm:$0xff] }
 0x24c   : > { %2604 = vmatprep.subr.mxu1 %v1637_v31  ;;  %v1586_v31 = vld [vmem:[#allocation11 + $0x128] sm:$0xff] }
 0x24d   : > { %2605 = vmatpush3.msra.mxu1 %v1621_v32  ;;  %v1601_v32 = vld [vmem:[#allocation11 + $0x1a0] sm:$0xff] }
 0x24e   : > { %2606 = vmatprep.subr.mxu1 %v1636_v33  ;;  %v1585_v33 = vld [vmem:[#allocation11 + $0x120] sm:$0xff] }
 0x24f   : > { %2607 = vmatpush3.msra.mxu1 %v1620_v34  ;;  %v1600_v34 = vld [vmem:[#allocation11 + $0x198] sm:$0xff] }
 0x250   : > { %2608 = vmatprep.subr.mxu1 %v1635_v35  ;;  %v1584_v35 = vld [vmem:[#allocation11 + $0x118] sm:$0xff] }
 0x251   : > { %2609 = vmatpush3.msra.mxu1 %v1619_v36  ;;  %v1599_v36 = vld [vmem:[#allocation11 + $0x190] sm:$0xff] }
 0x252   : > { %2610 = vmatprep.subr.mxu1 %v1634_v37  ;;  %v1583_v37 = vld [vmem:[#allocation11 + $0x110] sm:$0xff] }
 0x253   : > { %2611 = vmatpush3.msra.mxu1 %v1618_v38  ;;  %v1598_v38 = vld [vmem:[#allocation11 + $0x188] sm:$0xff] }
 0x254   : > { %2612 = vmatprep.subr.mxu1 %v1633_v39  ;;  %v1582_v39 = vld [vmem:[#allocation11 + $0x108] sm:$0xff] }
 0x255   : > { %2613 = vmatpush3.msra.mxu1 %v1617_v40  ;;  %v1597_v40 = vld [vmem:[#allocation11 + $0x180] sm:$0xff] }
 0x256   : > { %2614 = vmatprep.subr.mxu1 %v1632_v41  ;;  %v1581_v41 = vld [vmem:[#allocation11 + $0x100] sm:$0xff] }
 0x257   : > { %2615 = vmatpush3.msra.mxu1 %v1616_v42  ;;  %v1690_v42 = vrot.slane %v3540_v14, %v1151_v62  ;;  %v1673_v62 = vld [vmem:[#allocation11 + $0x3e0] sm:$0xff] }
 0x258   : > { %2616 = vmatprep.subr.mxu1 %v1631_v43  ;;  %v1676_v43 = vld [vmem:[#allocation11 + $0x3f8] sm:$0xff] }
 0x259   : > { %2617 = vmatpush3.msra.mxu1 %v1615_v44  ;;  %v1710_v44 = vrot.slane %v3540_v14, %v1171_v2  ;;  %v1656_v2 = vld [vmem:[#allocation11 + $0x358] sm:$0xff] }
 0x25a   : > { %2618 = vmatprep.subr.mxu1 %v1630_v45  ;;  %v1660_v45 = vld [vmem:[#allocation11 + $0x378] sm:$0xff] }
 0x25b   : > { %2619 = vmatpush3.msra.mxu1 %v1614_v46  ;;  %v1675_v46 = vld [vmem:[#allocation11 + $0x3f0] sm:$0xff] }
 0x25c   : > { %2620 = vmatprep.subr.mxu1 %v1629_v47  ;;  %v1659_v47 = vld [vmem:[#allocation11 + $0x370] sm:$0xff] }
 0x25d   : > { %2621 = vmatpush3.msra.mxu1 %v1613_v49  ;;  %v1658_v49 = vld [vmem:[#allocation11 + $0x368] sm:$0xff] }
 0x25e   : > { %1924 = vmatmul.mubr.f32.vlgmr.msra.gmra.mxu1 %v1698_v50  ;;  %2729 = vmatprep.subr.mxu1 %v3154_v21  ;;  %v1657_v50 = vld [vmem:[#allocation11 + $0x360] sm:$0xff] }
 0x25f   : > { %2761 = vmatprep.mubr.msk.f32.mxu1 %vm3155_vm4, %v3154_v21 }
 0x2ba   : > { %v2395_v51 = vpop.f32.mrf.mxu0  ;;  %v2430_v53 = vpop.f32.mrf.mxu1 }
 0x2bc   : > { %v2396_v52 = vpop.f32.mrf.mxu0  ;;  %v2431_v55 = vpop.f32.mrf.mxu1 }
 0x2bd   : > { %v2397_v54 = vadd.f32 %v2396_v52, %v2395_v51  ;;  %v2432_v59 = vadd.f32 %v2431_v55, %v2430_v53  ;;  %v1672_v51 = vld [vmem:[#allocation11 + $0x3d8] sm:$0xff]  ;;  %v1671_v52 = vld [vmem:[#allocation11 + $0x3d0] sm:$0xff]  ;;  %v1669_v55 = vld [vmem:[#allocation11 + $0x3c0] sm:$0xff] }
 0x2be   : > { %v1655_v53 = vld [vmem:[#allocation11 + $0x350] sm:$0xff] }
 0x2bf   : > { %v1248_v57 = vadd.f32 %v2397_v54, %v1139_v1  ;;  %v1670_v54 = vld [vmem:[#allocation11 + $0x3c8] sm:$0xff] }
 0x2c0   : > { %v1654_v1 = vld [vmem:[#allocation11 + $0x348] sm:$0xff] }
 0x2c1   : > { %v1318_v4 = vadd.f32 %v2432_v59, %v1248_v57  ;;  %v1653_v57 = vld [vmem:[#allocation11 + $0x340] sm:$0xff]  ;;  %v1667_v59 = vld [vmem:[#allocation11 + $0x3b0] sm:$0xff] }
 0x2db   : > { %v2465_v11 = vpop.f32.mrf.mxu0  ;;  %v2500_v58 = vpop.f32.mrf.mxu1 }
 0x2dd   : > { %v2466_v63 = vpop.f32.mrf.mxu0  ;;  %v2501_v3 = vpop.f32.mrf.mxu1 }
 0x2de   : > { %v2467_v5 = vadd.f32 %v2466_v63, %v2465_v11  ;;  %v2502_v7 = vadd.f32 %v2501_v3, %v2500_v58  ;;  %v1668_v11 = vld [vmem:[#allocation11 + $0x3b8] sm:$0xff]  ;;  %v1651_v63 = vld [vmem:[#allocation11 + $0x330] sm:$0xff]  ;;  %v1666_v3 = vld [vmem:[#allocation11 + $0x3a8] sm:$0xff] }
 0x2df   : > { %v1652_v58 = vld [vmem:[#allocation11 + $0x338] sm:$0xff] }
 0x2e0   : > { %v1388_v6 = vadd.f32 %v2467_v5, %v1318_v4  ;;  %v1650_v4 = vld [vmem:[#allocation11 + $0x328] sm:$0xff]  ;;  %v1665_v5 = vld [vmem:[#allocation11 + $0x3a0] sm:$0xff] }
 0x2e2   : > { %v1458_v9 = vadd.f32 %v2502_v7, %v1388_v6  ;;  %v1649_v6 = vld [vmem:[#allocation11 + $0x320] sm:$0xff]  ;;  %v1664_v7 = vld [vmem:[#allocation11 + $0x398] sm:$0xff] }
 0x2e4   : > { %2727 = vmatmul.mubr.f32.vlgmr.msra.gmra.mxu0 %v1458_v9  ;;  %v1663_v9 = vld [vmem:[#allocation11 + $0x390] sm:$0xff] }
 0x2e5   : > { %2556 = vmatpush3.msra.mxu0 %v1596_v10  ;;  %1853 = vmatprep.mubr.f32.mxu0 %v1694_v8  ;;  %v1648_v8 = vld [vmem:[#allocation11 + $0x318] sm:$0xff]  ;;  %v1647_v10 = vld [vmem:[#allocation11 + $0x310] sm:$0xff] }
 0x2e6   : > { %2557 = vmatprep.subr.mxu0 %v1611_v13  ;;  %v1662_v13 = vld [vmem:[#allocation11 + $0x388] sm:$0xff] }
 0x2e7   : > { %2558 = vmatpush3.msra.mxu0 %v1595_v15  ;;  %v1646_v15 = vld [vmem:[#allocation11 + $0x308] sm:$0xff] }
 0x2e8   : > { %2559 = vmatprep.subr.mxu0 %v1610_v16  ;;  %v1661_v16 = vld [vmem:[#allocation11 + $0x380] sm:$0xff] }
 0x2e9   : > { %2560 = vmatpush3.msra.mxu0 %v1594_v17  ;;  %v1645_v17 = vld [vmem:[#allocation11 + $0x300] sm:$0xff] }
 0x2ea   : > { %2561 = vmatprep.subr.mxu0 %v1609_v18  ;;  %v1706_v18 = vrot.slane %v3540_v14, %v1167_v12  ;;  %v2010_v12 = vld [vmem:[#allocation13 + $0x58] sm:$0xff]  ;;  %v2009_v14 = vld [vmem:[#allocation13 + $0x50] sm:$0xff] }
 0x2eb   : > { %2562 = vmatpush3.msra.mxu0 %v1593_v19  ;;  %v2014_v19 = vld [vmem:[#allocation13 + $0x78] sm:$0xff] }
 0x2ec   : > { %2563 = vmatprep.subr.mxu0 %v1608_v20  ;;  %v2013_v20 = vld [vmem:[#allocation13 + $0x70] sm:$0xff]  ;;  %2730 = vmatpush3.msra.mxu1 %v2014_v19 }
 0x2ed   : > { %2564 = vmatpush3.msra.mxu0 %v1592_v22  ;;  %2731 = vmatprep.subr.mxu1 %v3154_v21  ;;  %v2012_v22 = vld [vmem:[#allocation13 + $0x68] sm:$0xff] }
 0x2ee   : > { %2565 = vmatprep.subr.mxu0 %v1607_v61  ;;  %2732 = vmatpush3.msra.mxu1 %v2013_v20  ;;  %v2008_v61 = vld [vmem:[#allocation13 + $0x48] sm:$0xff] }
 0x2ef   : > { %2566 = vmatpush3.msra.mxu0 %v1591_v23  ;;  %2733 = vmatprep.subr.mxu1 %v3154_v21  ;;  %v2007_v23 = vld [vmem:[#allocation13 + $0x40] sm:$0xff] }
 0x2f0   : > { %2567 = vmatprep.subr.mxu0 %v1606_v24  ;;  %2734 = vmatpush3.msra.mxu1 %v2012_v22  ;;  %v2006_v24 = vld [vmem:[#allocation13 + $0x38] sm:$0xff] }
 0x2f1   : > { %2568 = vmatpush3.msra.mxu0 %v1590_v0  ;;  %2735 = vmatprep.subr.mxu1 %v3154_v21  ;;  %v2005_v0 = vld [vmem:[#allocation13 + $0x30] sm:$0xff] }
 0x2f2   : > { %2569 = vmatprep.subr.mxu0 %v1605_v26  ;;  %2736 = vmatpush3.msra.mxu1 %v2011_v25  ;;  %v2004_v26 = vld [vmem:[#allocation13 + $0x28] sm:$0xff] }
 0x2f3   : > { %2570 = vmatpush3.msra.mxu0 %v1589_v60  ;;  %2737 = vmatprep.subr.mxu1 %v3154_v21  ;;  %v2003_v60 = vld [vmem:[#allocation13 + $0x20] sm:$0xff] }
 0x2f4   : > { %2571 = vmatprep.subr.mxu0 %v1604_v27  ;;  %2738 = vmatpush3.msra.mxu1 %v2010_v12  ;;  %v2002_v27 = vld [vmem:[#allocation13 + $0x18] sm:$0xff] }
 0x2f5   : > { %2572 = vmatpush3.msra.mxu0 %v1588_v56  ;;  %2739 = vmatprep.subr.mxu1 %v3154_v21  ;;  %v2001_v56 = vld [vmem:[#allocation13 + $0x10] sm:$0xff] }
 0x2f6   : > { %2573 = vmatprep.subr.mxu0 %v1603_v28  ;;  %2740 = vmatpush3.msra.mxu1 %v2009_v14  ;;  %v2000_v28 = vld [vmem:[#allocation13 + $0x8] sm:$0xff] }
 0x2f7   : > { %2574 = vmatpush3.msra.mxu0 %v1587_v29  ;;  %2741 = vmatprep.subr.mxu1 %v3154_v21  ;;  %v1999_v29 = vld [vmem:[#allocation13] sm:$0xff] }
 0x2f8   : > { %2575 = vmatprep.subr.mxu0 %v1602_v30  ;;  %2742 = vmatpush3.msra.mxu1 %v2008_v61  ;;  %v2104_v30 = vld [vmem:[%s3739_s18 + $0x78] sm:$0xff] }
 0x2f9   : > { %2576 = vmatpush3.msra.mxu0 %v1586_v31  ;;  %2743 = vmatprep.subr.mxu1 %v3154_v21  ;;  %v2103_v31 = vld [vmem:[%s3739_s18 + $0x70] sm:$0xff] }
 0x2fa   : > { %2577 = vmatprep.subr.mxu0 %v1601_v32  ;;  %2744 = vmatpush3.msra.mxu1 %v2007_v23  ;;  %v2102_v32 = vld [vmem:[%s3739_s18 + $0x68] sm:$0xff] }
 0x2fb   : > { %2578 = vmatpush3.msra.mxu0 %v1585_v33  ;;  %2745 = vmatprep.subr.mxu1 %v3154_v21  ;;  %v2101_v33 = vld [vmem:[%s3739_s18 + $0x60] sm:$0xff] }
 0x2fc   : > { %2579 = vmatprep.subr.mxu0 %v1600_v34  ;;  %2746 = vmatpush3.msra.mxu1 %v2006_v24  ;;  %v2100_v34 = vld [vmem:[%s3739_s18 + $0x58] sm:$0xff] }
 0x2fd   : > { %2580 = vmatpush3.msra.mxu0 %v1584_v35  ;;  %2747 = vmatprep.subr.mxu1 %v3154_v21 }
 0x2fe   : > { %2581 = vmatprep.subr.mxu0 %v1599_v36  ;;  %2748 = vmatpush3.msra.mxu1 %v2005_v0 }
 0x2ff   : > { %2582 = vmatpush3.msra.mxu0 %v1583_v37  ;;  %2749 = vmatprep.subr.mxu1 %v3154_v21  ;;  %v2552_v37 = vpop.f32.mrf.mxu1 }
 0x300   : > { %2583 = vmatprep.subr.mxu0 %v1598_v38  ;;  %2750 = vmatpush3.msra.mxu1 %v2004_v26 }
 0x301   : > { %2584 = vmatpush3.msra.mxu0 %v1582_v39  ;;  %2751 = vmatprep.subr.mxu1 %v3154_v21  ;;  %v2553_v38 = vpop.f32.mrf.mxu1 }
 0x302   : > { %2585 = vmatprep.subr.mxu0 %v1597_v40  ;;  %2752 = vmatpush3.msra.mxu1 %v2003_v60  ;;  %v2554_v40 = vadd.f32 %v2553_v38, %v2552_v37 }
 0x303   : > { %2586 = vmatpush3.msra.mxu0 %v1581_v41  ;;  %2753 = vmatprep.subr.mxu1 %v3154_v21  ;;  %v1677_v41 = vld [vmem:[%s3740_s19] sm:$0x1] }
 0x304   : > { %1854 = vmatmul.mubr.f32.vlgmr.msra.gmra.mxu0 %v1690_v42  ;;  %2625 = vmatprep.subr.mxu0 %v1676_v43 }
 0x305   : > { %2626 = vmatpush3.msra.mxu0 %v1660_v45  ;;  %1993 = vmatprep.mubr.f32.mxu0 %v1710_v44  ;;  %v1786_v44 = vadd.f32 %v2554_v40, %v1677_v41 }
 0x306   : > { %2627 = vmatprep.subr.mxu0 %v1675_v46  ;;  %2754 = vmatpush3.msra.mxu1 %v2002_v27 }
 0x307   : > { %2628 = vmatpush3.msra.mxu0 %v1659_v47  ;;  %2755 = vmatprep.subr.mxu1 %v3154_v21 }
 0x308   : > { %2629 = vmatprep.subr.mxu0 %v1674_v48  ;;  %2756 = vmatpush3.msra.mxu1 %v2001_v56 }
 0x309   : > { %2630 = vmatpush3.msra.mxu0 %v1658_v49  ;;  %2757 = vmatprep.subr.mxu1 %v3154_v21 }
 0x30a   : > { %2631 = vmatprep.subr.mxu0 %v1673_v62  ;;  %2758 = vmatpush3.msra.mxu1 %v2000_v28 }
 0x30b   : > { %2632 = vmatpush3.msra.mxu0 %v1657_v50  ;;  %2759 = vmatprep.subr.mxu1 %v3154_v21 }
 0x30c   : > { %2633 = vmatprep.subr.mxu0 %v1672_v51  ;;  %2760 = vmatpush3.msra.mxu1 %v1999_v29 }
 0x30d   : > { %2634 = vmatpush3.msra.mxu0 %v1656_v2 }
 0x30e   : > { %2635 = vmatprep.subr.mxu0 %v1671_v52  ;;  %v2099_v52 = vld [vmem:[%s3739_s18 + $0x50] sm:$0xff] }
 0x30f   : > { %2636 = vmatpush3.msra.mxu0 %v1655_v53  ;;  %v2098_v53 = vld [vmem:[%s3739_s18 + $0x48] sm:$0xff] }
 0x310   : > { %2637 = vmatprep.subr.mxu0 %v1670_v54  ;;  %v2097_v54 = vld [vmem:[%s3739_s18 + $0x40] sm:$0xff] }
 0x311   : > { %2638 = vmatpush3.msra.mxu0 %v1654_v1  ;;  %v2096_v1 = vld [vmem:[%s3739_s18 + $0x38] sm:$0xff] }
 0x312   : > { %2639 = vmatprep.subr.mxu0 %v1669_v55  ;;  %v2095_v55 = vld [vmem:[%s3739_s18 + $0x30] sm:$0xff] }
 0x313   : > { %2640 = vmatpush3.msra.mxu0 %v1653_v57  ;;  %v2094_v57 = vld [vmem:[%s3739_s18 + $0x28] sm:$0xff] }
 0x314   : > { %2641 = vmatprep.subr.mxu0 %v1668_v11  ;;  %v2093_v11 = vld [vmem:[%s3739_s18 + $0x20] sm:$0xff] }
 0x315   : > { %2642 = vmatpush3.msra.mxu0 %v1652_v58  ;;  %v2092_v58 = vld [vmem:[%s3739_s18 + $0x18] sm:$0xff] }
 0x316   : > { %2643 = vmatprep.subr.mxu0 %v1667_v59  ;;  %v2091_v59 = vld [vmem:[%s3739_s18 + $0x10] sm:$0xff] }
 0x317   : > { %2644 = vmatpush3.msra.mxu0 %v1651_v63  ;;  %v2090_v63 = vld [vmem:[%s3739_s18 + $0x8] sm:$0xff] }
 0x318   : > { %2645 = vmatprep.subr.mxu0 %v1666_v3  ;;  %v2089_v3 = vld [vmem:[%s3739_s18] sm:$0xff] }
 0x319   : > { %2646 = vmatpush3.msra.mxu0 %v1650_v4  ;;  %v1477_v4 = vld [vmem:[%s3741_s5] sm:$0x1] }
 0x31a   : > { %2647 = vmatprep.subr.mxu0 %v1665_v5 }
 0x31b   : > { %2648 = vmatpush3.msra.mxu0 %v1649_v6  ;;  %v2015_v6 = vld [vmem:[%s3742_s24] sm:$0x1] }
 0x31c   : > { %2649 = vmatprep.subr.mxu0 %v1664_v7 }
 0x31d   : > { %2650 = vmatpush3.msra.mxu0 %v1648_v8 }
 0x31e   : > { %2651 = vmatprep.subr.mxu0 %v1663_v9  ;;  %v2622_v43 = vpop.f32.mrf.mxu1 }
 0x31f   : > { %2652 = vmatpush3.msra.mxu0 %v1647_v10 }
 0x320   : > { %2653 = vmatprep.subr.mxu0 %v1662_v13  ;;  %v2623_v46 = vpop.f32.mrf.mxu1 }
 0x321   : > { %2654 = vmatpush3.msra.mxu0 %v1646_v15  ;;  %v2624_v48 = vadd.f32 %v2623_v46, %v2622_v43 }
 0x322   : > { %2655 = vmatprep.subr.mxu0 %v1661_v16  ;;  %v2105_v16 = vld [vmem:[#allocation5] sm:$0x1] }
 0x323   : > { %2656 = vmatpush3.msra.mxu0 %v1645_v17 }
 0x324   : > { %1994 = vmatmul.mubr.f32.vlgmr.msra.gmra.mxu0 %v1706_v18  ;;  %2764 = vmatprep.subr.mxu0 %v3154_v21 }
 0x325   : > { %2796 = vmatprep.mubr.msk.f32.mxu0 %vm3155_vm4, %v3154_v21  ;;  %2765 = vmatpush3.msra.mxu0 %v2104_v30 }
 0x326   : > { %2766 = vmatprep.subr.mxu0 %v3154_v21 }
 0x327   : > { %2767 = vmatpush3.msra.mxu0 %v2103_v31 }
 0x328   : > { %2768 = vmatprep.subr.mxu0 %v3154_v21 }
 0x329   : > { %2769 = vmatpush3.msra.mxu0 %v2102_v32 }
 0x32a   : > { %2770 = vmatprep.subr.mxu0 %v3154_v21 }
 0x32b   : > { %2771 = vmatpush3.msra.mxu0 %v2101_v33 }
 0x32c   : > { %2772 = vmatprep.subr.mxu0 %v3154_v21 }
 0x32d   : > { %2773 = vmatpush3.msra.mxu0 %v2100_v34 }
 0x32e   : > { %2774 = vmatprep.subr.mxu0 %v3154_v21 }
 0x32f   : > { %2775 = vmatpush3.msra.mxu0 %v2099_v52 }
 0x330   : > { %2776 = vmatprep.subr.mxu0 %v3154_v21 }
 0x331   : > { %2777 = vmatpush3.msra.mxu0 %v2098_v53 }
 0x332   : > { %2778 = vmatprep.subr.mxu0 %v3154_v21 }
 0x333   : > { %2779 = vmatpush3.msra.mxu0 %v2097_v54 }
 0x334   : > { %2780 = vmatprep.subr.mxu0 %v3154_v21 }
 0x335   : > { %2781 = vmatpush3.msra.mxu0 %v2096_v1 }
 0x336   : > { %2782 = vmatprep.subr.mxu0 %v3154_v21 }
 0x337   : > { %2783 = vmatpush3.msra.mxu0 %v2095_v55 }
 0x338   : > { %2784 = vmatprep.subr.mxu0 %v3154_v21 }
 0x339   : > { %2785 = vmatpush3.msra.mxu0 %v2094_v57 }
 0x33a   : > { %2786 = vmatprep.subr.mxu0 %v3154_v21 }
 0x33b   : > { %2787 = vmatpush3.msra.mxu0 %v2093_v11 }
 0x33c   : > { %2788 = vmatprep.subr.mxu0 %v3154_v21 }
 0x33d   : > { %2789 = vmatpush3.msra.mxu0 %v2092_v58 }
 0x33e   : > { %2790 = vmatprep.subr.mxu0 %v3154_v21 }
 0x33f   : > { %2791 = vmatpush3.msra.mxu0 %v2091_v59 }
 0x340   : > { %2792 = vmatprep.subr.mxu0 %v3154_v21 }
 0x341   : > { %2793 = vmatpush3.msra.mxu0 %v2090_v63 }
 0x342   : > { %2794 = vmatprep.subr.mxu0 %v3154_v21 }
 0x343   : > { %2795 = vmatpush3.msra.mxu0 %v2089_v3 }
 0x3a4   : > { %v1544_v35 = vpop.f32.mrf.mxu0 }
 0x3a5   : > { %v1545_v5 = vadd.f32 %v1544_v35, %v1477_v4 }
 0x3a6   : > { %v2728_v36 = vpop.f32.mrf.mxu0 }
 0x3a7   : > { %2919 = vtanh.f32 %v1545_v5 }
 0x3b4   : > { %v2920_v10 = vpop.eup %2919 }
 0x3c4   : > { %v2587_v39 = vpop.f32.mrf.mxu0 }
 0x3c6   : > { %v2588_v42 = vpop.f32.mrf.mxu0 }
 0x3c7   : > { %v2589_v45 = vadd.f32 %v2588_v42, %v2587_v39 }
 0x3c9   : > { %v1856_v47 = vadd.f32 %v2589_v45, %v1786_v44 }
 0x3cb   : > { %v1926_v50 = vadd.f32 %v2624_v48, %v1856_v47 }
 0x3e4   : > { %v2657_v49 = vpop.f32.mrf.mxu0 }
 0x3e6   : > { %v2658_v62 = vpop.f32.mrf.mxu0 }
 0x3e7   : > { %v2659_v51 = vadd.f32 %v2658_v62, %v2657_v49 }
 0x3e9   : > { %v1996_v2 = vadd.f32 %v2659_v51, %v1926_v50 }
 0x3eb   : > { %2762 = vmatmul.mubr.f32.vlgmr.msra.gmra.mxu1 %v1996_v2 }
 0x4ab   : > { %v2082_v7 = vpop.f32.mrf.mxu1 }
 0x4ac   : > { %v2083_v8 = vadd.f32 %v2082_v7, %v2015_v6 }
 0x4ad   : > { %v2763_v9 = vpop.f32.mrf.mxu1 }
 0x4ae   : > { %2921 = vtanh.f32 %v2083_v8 }
 0x4bb   : > { %v2922_v13 = vpop.eup %2921 }
 0x4bc   : > { %v2087_v15 = vsub.f32 %v2920_v10, %v2922_v13 }
 0x4be   : > { %v2088_v21 = vand.u32 2147483647, %v2087_v15 }
 0x4c0   : > { %2797 = vmatmul.mubr.f32.vlgmr.msra.gmra.mxu0 %v2088_v21 }
 0x580   : > { %v2172_v17 = vpop.f32.mrf.mxu0 }
 0x581   : > { %v2173_v18 = vadd.f32 %v2172_v17, %v2105_v16 }
 0x582   : > { %v2798_v19 = vpop.f32.mrf.mxu0 }
 0x583   : > { %v2358_v20 = vmul.f32 -1.442695, %v2173_v18 }
 0x585   : > { %2923 = vpow2.f32 %v2358_v20 }
 0x592   : > { %v2924_v22 = vpop.eup %2923 }
 0x593   : > { %v2179_v25 = vadd.f32 1.0, %v2924_v22 }
 0x595   : > { %2925 = vrcp.f32 %v2179_v25 }
 0x5a2   : > { %v2926_v12 = vpop.eup %2925 }
 0x5a3   : > { %2183 = vst.msk [vmem:[%s601_s6] sm:$0x1] %vm2182_vm5, %v2926_v12 }
 0x5a4 PF: > { %s32_s12 = sadd.s32 1, %s3141_s12   ;;  %s3744_s20 = sld [smem:[#allocation18_spill]] }
 0x5a5   : > { %p29_p9 = scmp.ge.s32.totalorder %s32_s12, 10   ;;  %s3745_s27 = smov %s3117_s28 }
 0x5a6   : > { %s3746_s28 = smov %s3121_s29  ;;  %s3747_s29 = smov %s3347_s17 }
 0x5a7   : > { %s3748_s30 = smov %s3133_s15  ;;  %s3749_s14 = smov %s3137_s16 }
 0x5a8   : > { %s3751_s16 = smov %s3757_s25  ;;  %31 = sbr.rel (!%p29_p9) target bundleno = 19 (0x13), region = 156 }
 0x5aa   : > { %s3750_s15 = smov %s3744_s20 }
 0x5ad   :  { %2201 = vsyncpa [#allocation7], 1 }
 0x5ae   :  { %2203 = vsyncpa [#allocation7 + $0x1], 1 }
 0x5af   :  { %2204 = vsyncpa [#allocation9], 1 }
 0x5b0   :  { %2206 = vsyncpa [#allocation9 + $0x1], 1 }
 0x5b1   :  { %2207 = vsyncpa [#allocation12], 1 }

</bundles_post_ra>
